<compile_context>
chip_gen: v7x
topology: tpu7x:2x2x1
jax: 0.10.0
libtpu: 0.0.40
codegen_flags: <defaults>
</compile_context>

<pallas_src>
import functools
import math

import jax
import jax.numpy as jnp
from jax.experimental import pallas as pl
from jax.experimental.pallas import tpu as pltpu


# ----------------------------------------------------------------------------
# Kernel
# ----------------------------------------------------------------------------
def _decoder_kernel(xt_ref, te_ref, de_ref, e_ref, et_ref, h0_ref,
                    wg_ref, bg_ref, wu_ref, bu_ref,
                    out_ref, a_scr, x_scr,
                    *, num_layers, embed_dim, hidden_dim, in_dim, block_b,
                    num_nodes, compute_dtype):
    l = pl.program_id(1)
    f32 = jnp.float32
    cdt = compute_dtype
    H, Cin, D, N, TB = hidden_dim, in_dim, embed_dim, num_nodes, block_b
    M = TB * N

    # ---- once per batch tile (l == 0): dynamic adjacency + initial input ----
    @pl.when(l == 0)
    def _init():
        te = te_ref[...].astype(f32)                      # (TB, D)
        de = de_ref[...].astype(f32)                      # (TB, D)
        e = e_ref[...].astype(f32)                        # (N, D)
        et = et_ref[...].astype(f32)                      # (D, N)
        e1 = jnp.tanh(e[None, :, :] * te[:, None, :])     # (TB, N, D)
        e2t = jnp.tanh(et[None, :, :] * de[:, :, None])   # (TB, D, N) (pre-T)
        sim = jnp.einsum('bnd,bdm->bnm', e1.astype(cdt), e2t.astype(cdt),
                         preferred_element_type=f32)      # (TB, N, N)
        sim = jnp.maximum(sim, 0.0)
        sim = sim - jnp.max(sim, axis=-1, keepdims=True)
        p = jnp.exp(sim)
        denom = jnp.sum(p, axis=-1, keepdims=True)
        a_scr[...] = (p * pl.reciprocal(denom, approx=True)).astype(a_scr.dtype)
        x_scr[...] = xt_ref[...].astype(x_scr.dtype)

    # ---- one PDG2Seq cell (per layer) ---------------------------------------
    a3 = a_scr[...]                                       # (TB, N, N)   cdt
    x3 = x_scr[...]                                       # (TB, N, Cin) cdt
    h3f = h0_ref[...].astype(f32)                         # (TB, N, H)   f32
    h3c = h3f.astype(cdt)
    e_f32 = e_ref[...].astype(f32)                        # (N, D)
    # node-embedding columns broadcast over the batch tile, flattened to rows
    ecols = jnp.broadcast_to(e_f32[None, :, :], (TB, N, D)).reshape(M, D)

    def gconv(xb_flat, w_ref, b_ref):
        """sum_d E[n,d] * (X_flat @ Wpool[l,d]) + (E @ bpool)[l]  (M = TB*N)."""
        o_dim = w_ref.shape[-1]
        acc = jnp.zeros((M, o_dim), f32)
        for d in range(D):                                # D small: static unroll
            md = jnp.dot(xb_flat, w_ref[l, d], preferred_element_type=f32)
            acc = acc + md * ecols[:, d:d + 1]
        bias = jnp.broadcast_to(b_ref[l][None, :, :], (TB, N, o_dim))
        return acc + bias.reshape(M, o_dim)

    # gate graph conv on [x, h, A@x, A@h]  (one K = 2*(Cin+H) contraction)
    xh3 = jnp.concatenate([x3, h3c], axis=-1)             # (TB, N, Cin+H)
    axh3 = jnp.einsum('bnm,bmi->bni', a3, xh3,
                      preferred_element_type=f32)         # (TB, N, Cin+H)
    xb_g = jnp.concatenate([xh3, axh3.astype(cdt)], axis=-1).reshape(M, -1)
    zr = jax.nn.sigmoid(gconv(xb_g, wg_ref, bg_ref))      # (M, 2H) f32
    z = zr[:, :H]
    r = zr[:, H:]

    # candidate graph conv on [x, z*h, A@x, A@(z*h)]
    hf = h3f.reshape(M, H)
    zh = z * hf                                           # (M, H) f32
    zh3c = zh.reshape(TB, N, H).astype(cdt)
    azh3 = jnp.einsum('bnm,bmi->bni', a3, zh3c,
                      preferred_element_type=f32)         # (TB, N, H)
    xb_u = jnp.concatenate(
        [x3, zh3c, axh3[..., :Cin].astype(cdt), azh3.astype(cdt)],
        axis=-1).reshape(M, -1)
    hc = jnp.tanh(gconv(xb_u, wu_ref, bu_ref))            # (M, H) f32

    # TODO(synk): gate roles follow the AGCRN/DDGCRN convention of the bundled
    # pure-JAX reference (h_new = r*h + (1-r)*hc); verify vs real PDG2SeqCell.
    h_new = (r * hf + (1.0 - r) * hc).reshape(TB, N, H)
    out_ref[...] = h_new.astype(out_ref.dtype)            # one whole-tile store

    if num_layers > 1:
        @pl.when(l + 1 < pl.num_programs(1))
        def _carry():
            x_scr[...] = h_new.astype(x_scr.dtype)        # next layer's input


# ----------------------------------------------------------------------------
# Host-side weight prep: keep the raw weight pools (Wpool contraction over the
# node embedding happens in-kernel via the D-loop), flatten (k, i) -> ki so the
# kernel's [x, h, Ax, Ah] concat matches; biases are contracted with E once.
# ----------------------------------------------------------------------------
def _prepare_weights(layer_params, E, weight_dtype):
    wg_l, bg_l, wu_l, bu_l = [], [], [], []
    for p in layer_params:
        d, k, i, og = p['wg'].shape
        assert k == 2, "kernel assumes cheb_k == 2 (supports [I, A])"
        wg_l.append(p['wg'].reshape(d, k * i, og))
        wu_l.append(p['wu'].reshape(d, k * i, p['wu'].shape[-1]))
        bg_l.append(E @ p['bg'])
        bu_l.append(E @ p['bu'])
    wg = jnp.stack(wg_l).astype(weight_dtype)      # (L, D, 2*(Cin+H), 2H)
    wu = jnp.stack(wu_l).astype(weight_dtype)      # (L, D, 2*(Cin+H),  H)
    bg = jnp.stack(bg_l).astype(jnp.float32)       # (L, N, 2H)
    bu = jnp.stack(bu_l).astype(jnp.float32)       # (L, N,  H)
    return wg, bg, wu, bu


def _default_batch_tile(batch):
    # Prefer >= 2 batch tiles (feeds both v7x TensorCores) with TB % 8 == 0
    # (sublane constraint on the (TB, D) blocks); otherwise fall back to B.
    best = None
    for tb in range(8, batch // 2 + 1, 8):
        if batch % tb == 0:
            best = tb
    return best if best is not None else batch


def _nbytes(shape, dtype):
    return int(math.prod(shape)) * jnp.dtype(dtype).itemsize


# ----------------------------------------------------------------------------
# Wrapper mirroring PDG2Seq_Dncoder.forward
# ----------------------------------------------------------------------------
def pdg2seq_decoder_forward(xt, init_state, node_embeddings, layer_params, *,
                            batch_tile=None, matmul_dtype=jnp.bfloat16,
                            out_dtype=None):
    te, de, E = node_embeddings
    B, N, Cin = xt.shape
    L = init_state.shape[0]
    assert len(layer_params) == L
    H = layer_params[0]['bu'].shape[-1]
    D = E.shape[-1]
    assert te.shape == (B, D) and de.shape == (B, D), \
        "time_dim == embed_dim assumed (see TODO at top of file)"
    assert layer_params[0]['wg'].shape[2] == Cin + H
    if L > 1:
        # torch builds every cell with dim_in; chaining state into the next
        # layer is only shape-consistent when dim_in == dim_out.
        assert Cin == H, "multi-layer decoder requires dim_in == dim_out"

    TB = _default_batch_tile(B) if batch_tile is None else batch_tile
    assert B % TB == 0 and (TB == B or TB % 8 == 0), \
        "batch tile must cover B or be a multiple of 8 (sublane constraint)"

    out_dtype = matmul_dtype if out_dtype is None else out_dtype
    wg, bg, wu, bu = _prepare_weights(layer_params, E, matmul_dtype)
    ET = jnp.transpose(E)                                 # (D, N) pre-transposed

    kernel = functools.partial(
        _decoder_kernel, num_layers=L, embed_dim=D, hidden_dim=H, in_dim=Cin,
        block_b=TB, num_nodes=N, compute_dtype=matmul_dtype)

    grid = (B // TB, L)
    KI = 2 * (Cin + H)

    const2 = lambda b, l: (0, 0)
    const3 = lambda b, l: (0, 0, 0)
    const4 = lambda b, l: (0, 0, 0, 0)

    in_specs = [
        pl.BlockSpec((TB, N, Cin), lambda b, l: (b, 0, 0)),          # xt
        pl.BlockSpec((TB, D), lambda b, l: (b, 0)),                  # te
        pl.BlockSpec((TB, D), lambda b, l: (b, 0)),                  # de
        pl.BlockSpec((N, D), const2),                                # E
        pl.BlockSpec((D, N), const2),                                # E^T
        pl.BlockSpec((None, TB, N, H), lambda b, l: (l, b, 0, 0)),   # init_state
        pl.BlockSpec((L, D, KI, 2 * H), const4),                     # Wg pool (resident)
        pl.BlockSpec((L, N, 2 * H), const3),                         # bg       (resident)
        pl.BlockSpec((L, D, KI, H), const4),                         # Wu pool  (resident)
        pl.BlockSpec((L, N, H), const3),                             # bu       (resident)
    ]
    out_spec = pl.BlockSpec((None, TB, N, H), lambda b, l: (l, b, 0, 0))

    # VMEM budget: double-buffered per-step blocks + resident weights + scratch
    # (adjacency / layer carry in the compute dtype -> fits v7x's 64 MiB).
    blk_in = (_nbytes((TB, N, Cin), xt.dtype) + 2 * _nbytes((TB, D), te.dtype)
              + _nbytes((N, D), E.dtype) + _nbytes((D, N), E.dtype)
              + _nbytes((TB, N, H), init_state.dtype))
    blk_out = _nbytes((TB, N, H), out_dtype)
    blk_w = (_nbytes(wg.shape, wg.dtype) + _nbytes(bg.shape, bg.dtype)
             + _nbytes(wu.shape, wu.dtype) + _nbytes(bu.shape, bu.dtype))
    scratch = (_nbytes((TB, N, N), matmul_dtype)
               + _nbytes((TB, N, Cin), matmul_dtype))
    est = 2 * (blk_in + blk_out + blk_w) + scratch + (8 << 20)
    vmem_limit = int(min(max(est, 32 << 20), 100 << 20))

    out = pl.pallas_call(
        kernel,
        out_shape=jax.ShapeDtypeStruct((L, B, N, H), out_dtype),
        grid_spec=pltpu.PrefetchScalarGridSpec(
            num_scalar_prefetch=0,
            grid=grid,
            in_specs=in_specs,
            out_specs=out_spec,
            scratch_shapes=[pltpu.VMEM((TB, N, N), matmul_dtype),
                            pltpu.VMEM((TB, N, Cin), matmul_dtype)],
        ),
        compiler_params=pltpu.CompilerParams(
            dimension_semantics=("parallel", "arbitrary"),
            vmem_limit_bytes=vmem_limit,
        ),
    )(xt, te, de, E, ET, init_state, wg, bg, wu, bu)

    current_inputs = out[L - 1]
    output_hidden = [out[i] for i in range(L)]
    return current_inputs, output_hidden


# ----------------------------------------------------------------------------
# Pure-JAX reference (torch-style), used only for verification.
# ----------------------------------------------------------------------------
def _gconv_ref(inp, A, E, wp, bp):
    xg = jnp.stack([inp, jnp.einsum('bnm,bmi->bni', A, inp)], axis=2)  # (B,N,K,I)
    W = jnp.einsum('nd,dkio->nkio', E, wp)
    b = E @ bp
    return jnp.einsum('bnki,nkio->bno', xg, W) + b[None]


def _cell_ref(x, h, te, de, E, p):
    H = p['bu'].shape[-1]
    E1 = jnp.tanh(E[None] * te[:, None, :])
    E2 = jnp.tanh(E[None] * de[:, None, :])
    A = jax.nn.softmax(jnp.maximum(jnp.einsum('bnd,bmd->bnm', E1, E2), 0.0), axis=-1)
    zr = jax.nn.sigmoid(_gconv_ref(jnp.concatenate([x, h], -1), A, E, p['wg'], p['bg']))
    z, r = zr[..., :H], zr[..., H:]
    hc = jnp.tanh(_gconv_ref(jnp.concatenate([x, z * h], -1), A, E, p['wu'], p['bu']))
    return r * h + (1.0 - r) * hc


def decoder_ref(xt, init_state, node_embeddings, layer_params):
    te, de, E = node_embeddings
    current = xt
    hidden = []
    for i, p in enumerate(layer_params):
        state = _cell_ref(current, init_state[i], te, de, E, p)
        hidden.append(state)
        current = state
    return current, hidden


if __name__ == "__main__":
    B, N = 2, 16
    dim_in = dim_out = 32     # decoder chains its state back as input, so the
                              # torch construction requires dim_in == dim_out
    cheb_k, embed_dim = 2, 8
    num_layers = 2

    key = jax.random.PRNGKey(0)
    ks = jax.random.split(key, 5 + 4 * num_layers)

    xt = jax.random.normal(ks[0], (B, N, dim_in), jnp.float32)
    te = jax.random.normal(ks[1], (B, embed_dim), jnp.float32)
    de = jax.random.normal(ks[2], (B, embed_dim), jnp.float32)
    E = jax.random.normal(ks[3], (N, embed_dim), jnp.float32)
    init_state = 0.5 * jax.random.normal(ks[4], (num_layers, B, N, dim_out), jnp.float32)

    layer_params = []
    for li in range(num_layers):
        I = dim_in + dim_out
        base = 5 + 4 * li
        layer_params.append(dict(
            wg=0.1 * jax.random.normal(ks[base + 0], (embed_dim, cheb_k, I, 2 * dim_out), jnp.float32),
            bg=0.1 * jax.random.normal(ks[base + 1], (embed_dim, 2 * dim_out), jnp.float32),
            wu=0.1 * jax.random.normal(ks[base + 2], (embed_dim, cheb_k, I, dim_out), jnp.float32),
            bu=0.1 * jax.random.normal(ks[base + 3], (embed_dim, dim_out), jnp.float32),
        ))

    cur_ref, hidden_ref = decoder_ref(xt, init_state, [te, de, E], layer_params)

    # f32 matmul operands, f32 output: tight correctness check.
    cur, hidden = pdg2seq_decoder_forward(
        xt, init_state, [te, de, E], layer_params, matmul_dtype=jnp.float32)
    cur = jax.block_until_ready(cur)
    assert cur.shape == (B, N, dim_out)
    assert len(hidden) == num_layers and hidden[0].shape == (B, N, dim_out)
    if not jnp.allclose(cur, cur_ref, rtol=1e-2, atol=1e-2):
        raise AssertionError(
            "f32 Pallas output mismatch, max abs diff "
            f"{float(jnp.max(jnp.abs(cur - cur_ref)))}")
    for hk, hr in zip(hidden, hidden_ref):
        if not jnp.allclose(hk, hr, rtol=1e-2, atol=1e-2):
            raise AssertionError("f32 Pallas hidden mismatch vs reference")

    # Default bf16 path (bf16 MXU operands on all generations, bf16 output,
    # f32 softmax / gates / accumulation): loose sanity check.
    cur_bf, hidden_bf = pdg2seq_decoder_forward(
        xt, init_state, [te, de, E], layer_params)          # matmul_dtype=bf16
    cur_bf = jax.block_until_ready(cur_bf)
    if not jnp.allclose(cur_bf.astype(jnp.float32), cur_ref, rtol=1e-1, atol=1e-1):
        raise AssertionError(
            "bf16 Pallas output mismatch, max abs diff "
            f"{float(jnp.max(jnp.abs(cur_bf.astype(jnp.float32) - cur_ref)))}")
    for hk, hr in zip(hidden_bf, hidden_ref):
        if not jnp.allclose(hk.astype(jnp.float32), hr, rtol=1e-1, atol=1e-1):
            raise AssertionError("bf16 Pallas hidden mismatch vs reference")

    print("KERNEL_OK")
</pallas_src>

<mosaic_0001>
module attributes {stable_mosaic.version = 11 : i64} {
  func.func @_decoder_kernel(%arg0: i32, %arg1: i32, %arg2: memref<2x16x32xf32, #tpu.memory_space<vmem>>, %arg3: memref<2x8xf32, #tpu.memory_space<vmem>>, %arg4: memref<2x8xf32, #tpu.memory_space<vmem>>, %arg5: memref<16x8xf32, #tpu.memory_space<vmem>>, %arg6: memref<8x16xf32, #tpu.memory_space<vmem>>, %arg7: memref<1x2x16x32xf32, #tpu.memory_space<vmem>>, %arg8: memref<2x8x128x64xf32, #tpu.memory_space<vmem>>, %arg9: memref<2x16x64xf32, #tpu.memory_space<vmem>>, %arg10: memref<2x8x128x32xf32, #tpu.memory_space<vmem>>, %arg11: memref<2x16x32xf32, #tpu.memory_space<vmem>>, %arg12: memref<1x2x16x32xf32, #tpu.memory_space<vmem>>, %arg13: memref<2x16x16xf32, #tpu.memory_space<vmem>>, %arg14: memref<2x16x32xf32, #tpu.memory_space<vmem>>) attributes {dimension_semantics = [#tpu.dimension_semantics<parallel>, #tpu.dimension_semantics<arbitrary>], iteration_bounds = array<i64: 1, 2>, scalar_prefetch = 0 : i64, scratch_operands = 2 : i64, tpu.core_type = #tpu.core_type<tc>, window_params = [{transform_indices = @transform_0, window_bounds = array<i64: 2, 16, 32>}, {transform_indices = @transform_1, window_bounds = array<i64: 2, 8>}, {transform_indices = @transform_2, window_bounds = array<i64: 2, 8>}, {pipeline_mode = #tpu.pipeline_mode<synchronous>, transform_indices = @transform_3, window_bounds = array<i64: 16, 8>}, {pipeline_mode = #tpu.pipeline_mode<synchronous>, transform_indices = @transform_4, window_bounds = array<i64: 8, 16>}, {transform_indices = @transform_5, window_bounds = array<i64: 1, 2, 16, 32>}, {pipeline_mode = #tpu.pipeline_mode<synchronous>, transform_indices = @transform_6, window_bounds = array<i64: 2, 8, 128, 64>}, {pipeline_mode = #tpu.pipeline_mode<synchronous>, transform_indices = @transform_7, window_bounds = array<i64: 2, 16, 64>}, {pipeline_mode = #tpu.pipeline_mode<synchronous>, transform_indices = @transform_8, window_bounds = array<i64: 2, 8, 128, 32>}, {pipeline_mode = #tpu.pipeline_mode<synchronous>, transform_indices = @transform_9, window_bounds = array<i64: 2, 16, 32>}, {transform_indices = @transform_10, window_bounds = array<i64: 1, 2, 16, 32>}]} {
    %c0_i32 = arith.constant 0 : i32
    %0 = arith.cmpi eq, %arg1, %c0_i32 : i32
    %1 = arith.extui %0 : i1 to i32
    %c0_i32_0 = arith.constant 0 : i32
    %2 = arith.cmpi ne, %1, %c0_i32_0 : i32
    scf.if %2 {
      %c0_83 = arith.constant 0 : index
      %c0_84 = arith.constant 0 : index
      %190 = vector.load %arg3[%c0_83, %c0_84] : memref<2x8xf32, #tpu.memory_space<vmem>>, vector<2x8xf32>
      %c0_85 = arith.constant 0 : index
      %c0_86 = arith.constant 0 : index
      %191 = vector.load %arg4[%c0_85, %c0_86] : memref<2x8xf32, #tpu.memory_space<vmem>>, vector<2x8xf32>
      %c0_87 = arith.constant 0 : index
      %c0_88 = arith.constant 0 : index
      %192 = vector.load %arg5[%c0_87, %c0_88] : memref<16x8xf32, #tpu.memory_space<vmem>>, vector<16x8xf32>
      %c0_89 = arith.constant 0 : index
      %c0_90 = arith.constant 0 : index
      %193 = vector.load %arg6[%c0_89, %c0_90] : memref<8x16xf32, #tpu.memory_space<vmem>>, vector<8x16xf32>
      %194 = vector.shape_cast %192 : vector<16x8xf32> to vector<1x16x8xf32>
      %195 = vector.shape_cast %190 : vector<2x8xf32> to vector<2x1x8xf32>
      %196 = vector.broadcast %194 : vector<1x16x8xf32> to vector<2x16x8xf32>
      %197 = vector.broadcast %195 : vector<2x1x8xf32> to vector<2x16x8xf32>
      %198 = arith.mulf %196, %197 : vector<2x16x8xf32>
      %199 = math.tanh %198 : vector<2x16x8xf32>
      %200 = vector.shape_cast %193 : vector<8x16xf32> to vector<1x8x16xf32>
      %201 = vector.shape_cast %191 : vector<2x8xf32> to vector<2x8x1xf32>
      %202 = vector.broadcast %200 : vector<1x8x16xf32> to vector<2x8x16xf32>
      %203 = vector.broadcast %201 : vector<2x8x1xf32> to vector<2x8x16xf32>
      %204 = arith.mulf %202, %203 : vector<2x8x16xf32>
      %205 = math.tanh %204 : vector<2x8x16xf32>
      "tpu.trace_start"() <{level = 10 : i32, message = "bnd,bdm->bnm"}> : () -> ()
      %cst_91 = arith.constant dense<0.000000e+00> : vector<2x16x16xf32>
      %206 = tpu.matmul %199, %205, %cst_91 {dimension_numbers = #tpu.dot_dimension_numbers<[2], [1], [1], [2], [0, 0, 0, 1, 1, 2], [0], [0]>} : vector<2x16x8xf32>, vector<2x8x16xf32>, vector<2x16x16xf32> -> vector<2x16x16xf32>
      "tpu.trace_stop"() : () -> ()
      %cst_92 = arith.constant 0.000000e+00 : f32
      %207 = vector.broadcast %cst_92 : f32 to vector<2x16x16xf32>
      %208 = arith.maximumf %206, %207 : vector<2x16x16xf32>
      %cst_93 = arith.constant dense<0xFF800000> : vector<2x16xf32>
      %209 = vector.multi_reduction <maximumf>, %208, %cst_93 [2] : vector<2x16x16xf32> to vector<2x16xf32>
      %210 = vector.shape_cast %209 : vector<2x16xf32> to vector<2x16x1xf32>
      %211 = vector.broadcast %210 : vector<2x16x1xf32> to vector<2x16x16xf32>
      %212 = arith.subf %208, %211 : vector<2x16x16xf32>
      %213 = math.exp %212 : vector<2x16x16xf32>
      %cst_94 = arith.constant dense<0.000000e+00> : vector<2x16xf32>
      %214 = vector.multi_reduction <add>, %213, %cst_94 [2] : vector<2x16x16xf32> to vector<2x16xf32>
      %215 = vector.shape_cast %214 : vector<2x16xf32> to vector<2x16x1xf32>
      %216 = tpu.reciprocal %215 {approx = true} : vector<2x16x1xf32> -> vector<2x16x1xf32>
      %217 = vector.broadcast %216 : vector<2x16x1xf32> to vector<2x16x16xf32>
      %218 = arith.mulf %213, %217 : vector<2x16x16xf32>
      %c0_95 = arith.constant 0 : index
      %c0_96 = arith.constant 0 : index
      %c0_97 = arith.constant 0 : index
      %219 = vector.load %arg13[%c0_95, %c0_96, %c0_97] : memref<2x16x16xf32, #tpu.memory_space<vmem>>, vector<2x16x16xf32>
      tpu.vector_store %arg13[%c0_95, %c0_96, %c0_97], %218 {strides = array<i32>} : memref<2x16x16xf32, #tpu.memory_space<vmem>>, vector<2x16x16xf32>,
      %c0_98 = arith.constant 0 : index
      %c0_99 = arith.constant 0 : index
      %c0_100 = arith.constant 0 : index
      %220 = vector.load %arg2[%c0_98, %c0_99, %c0_100] : memref<2x16x32xf32, #tpu.memory_space<vmem>>, vector<2x16x32xf32>
      %c0_101 = arith.constant 0 : index
      %c0_102 = arith.constant 0 : index
      %c0_103 = arith.constant 0 : index
      %221 = vector.load %arg14[%c0_101, %c0_102, %c0_103] : memref<2x16x32xf32, #tpu.memory_space<vmem>>, vector<2x16x32xf32>
      tpu.vector_store %arg14[%c0_101, %c0_102, %c0_103], %220 {strides = array<i32>} : memref<2x16x32xf32, #tpu.memory_space<vmem>>, vector<2x16x32xf32>,
    } else {
    }
    %c0 = arith.constant 0 : index
    %c0_1 = arith.constant 0 : index
    %c0_2 = arith.constant 0 : index
    %3 = vector.load %arg13[%c0, %c0_1, %c0_2] : memref<2x16x16xf32, #tpu.memory_space<vmem>>, vector<2x16x16xf32>
    %c0_3 = arith.constant 0 : index
    %c0_4 = arith.constant 0 : index
    %c0_5 = arith.constant 0 : index
    %4 = vector.load %arg14[%c0_3, %c0_4, %c0_5] : memref<2x16x32xf32, #tpu.memory_space<vmem>>, vector<2x16x32xf32>
    %c0_6 = arith.constant 0 : index
    %c0_7 = arith.constant 0 : index
    %c0_8 = arith.constant 0 : index
    %c0_9 = arith.constant 0 : index
    %5 = vector.load %arg7[%c0_6, %c0_7, %c0_8, %c0_9] : memref<1x2x16x32xf32, #tpu.memory_space<vmem>>, vector<1x2x16x32xf32>
    %6 = vector.shape_cast %5 : vector<1x2x16x32xf32> to vector<2x16x32xf32>
    %c0_10 = arith.constant 0 : index
    %c0_11 = arith.constant 0 : index
    %7 = vector.load %arg5[%c0_10, %c0_11] : memref<16x8xf32, #tpu.memory_space<vmem>>, vector<16x8xf32>
    %8 = vector.shape_cast %7 : vector<16x8xf32> to vector<1x16x8xf32>
    %9 = vector.shape_cast %8 : vector<1x16x8xf32> to vector<1x16x8xf32>
    %10 = vector.broadcast %9 : vector<1x16x8xf32> to vector<2x16x8xf32>
    %11 = vector.shape_cast %10 : vector<2x16x8xf32> to vector<32x8xf32>
    %12 = tpu.concatenate %4, %6 in 2 : vector<2x16x32xf32>, vector<2x16x32xf32> -> vector<2x16x64xf32>
    "tpu.trace_start"() <{level = 10 : i32, message = "bnm,bmi->bni"}> : () -> ()
    %cst = arith.constant dense<0.000000e+00> : vector<2x16x64xf32>
    %13 = tpu.matmul %3, %12, %cst {dimension_numbers = #tpu.dot_dimension_numbers<[2], [1], [1], [2], [0, 0, 0, 1, 1, 2], [0], [0]>} : vector<2x16x16xf32>, vector<2x16x64xf32>, vector<2x16x64xf32> -> vector<2x16x64xf32>
    "tpu.trace_stop"() : () -> ()
    %14 = tpu.concatenate %12, %13 in 2 : vector<2x16x64xf32>, vector<2x16x64xf32> -> vector<2x16x128xf32>
    %15 = vector.shape_cast %14 : vector<2x16x128xf32> to vector<32x128xf32>
    %cst_12 = arith.constant 0.000000e+00 : f32
    %16 = vector.broadcast %cst_12 : f32 to vector<32x64xf32>
    %17 = arith.index_cast %arg1 : i32 to index
    %c0_13 = arith.constant 0 : index
    %c0_14 = arith.constant 0 : index
    %c0_15 = arith.constant 0 : index
    %18 = vector.load %arg8[%17, %c0_13, %c0_14, %c0_15] : memref<2x8x128x64xf32, #tpu.memory_space<vmem>>, vector<1x1x128x64xf32>
    %19 = vector.shape_cast %18 : vector<1x1x128x64xf32> to vector<128x64xf32>
    %cst_16 = arith.constant dense<0.000000e+00> : vector<32x64xf32>
    %20 = tpu.matmul %15, %19, %cst_16 {dimension_numbers = #tpu.dot_dimension_numbers<[1], [0], [0], [1], [0, 0, 1, 1], [], []>} : vector<32x128xf32>, vector<128x64xf32>, vector<32x64xf32> -> vector<32x64xf32>
    %21 = vector.extract_strided_slice %11 {offsets = [0, 0], sizes = [32, 1], strides = [1, 1]} : vector<32x8xf32> to vector<32x1xf32>
    %22 = vector.broadcast %21 : vector<32x1xf32> to vector<32x64xf32>
    %23 = arith.mulf %20, %22 : vector<32x64xf32>
    %24 = arith.addf %16, %23 : vector<32x64xf32>
    %25 = arith.index_cast %arg1 : i32 to index
    %c1 = arith.constant 1 : index
    %c0_17 = arith.constant 0 : index
    %c0_18 = arith.constant 0 : index
    %26 = vector.load %arg8[%25, %c1, %c0_17, %c0_18] : memref<2x8x128x64xf32, #tpu.memory_space<vmem>>, vector<1x1x128x64xf32>
    %27 = vector.shape_cast %26 : vector<1x1x128x64xf32> to vector<128x64xf32>
    %cst_19 = arith.constant dense<0.000000e+00> : vector<32x64xf32>
    %28 = tpu.matmul %15, %27, %cst_19 {dimension_numbers = #tpu.dot_dimension_numbers<[1], [0], [0], [1], [0, 0, 1, 1], [], []>} : vector<32x128xf32>, vector<128x64xf32>, vector<32x64xf32> -> vector<32x64xf32>
    %29 = vector.extract_strided_slice %11 {offsets = [0, 1], sizes = [32, 1], strides = [1, 1]} : vector<32x8xf32> to vector<32x1xf32>
    %30 = vector.broadcast %29 : vector<32x1xf32> to vector<32x64xf32>
    %31 = arith.mulf %28, %30 : vector<32x64xf32>
    %32 = arith.addf %24, %31 : vector<32x64xf32>
    %33 = arith.index_cast %arg1 : i32 to index
    %c2 = arith.constant 2 : index
    %c0_20 = arith.constant 0 : index
    %c0_21 = arith.constant 0 : index
    %34 = vector.load %arg8[%33, %c2, %c0_20, %c0_21] : memref<2x8x128x64xf32, #tpu.memory_space<vmem>>, vector<1x1x128x64xf32>
    %35 = vector.shape_cast %34 : vector<1x1x128x64xf32> to vector<128x64xf32>
    %cst_22 = arith.constant dense<0.000000e+00> : vector<32x64xf32>
    %36 = tpu.matmul %15, %35, %cst_22 {dimension_numbers = #tpu.dot_dimension_numbers<[1], [0], [0], [1], [0, 0, 1, 1], [], []>} : vector<32x128xf32>, vector<128x64xf32>, vector<32x64xf32> -> vector<32x64xf32>
    %37 = vector.extract_strided_slice %11 {offsets = [0, 2], sizes = [32, 1], strides = [1, 1]} : vector<32x8xf32> to vector<32x1xf32>
    %38 = vector.broadcast %37 : vector<32x1xf32> to vector<32x64xf32>
    %39 = arith.mulf %36, %38 : vector<32x64xf32>
    %40 = arith.addf %32, %39 : vector<32x64xf32>
    %41 = arith.index_cast %arg1 : i32 to index
    %c3 = arith.constant 3 : index
    %c0_23 = arith.constant 0 : index
    %c0_24 = arith.constant 0 : index
    %42 = vector.load %arg8[%41, %c3, %c0_23, %c0_24] : memref<2x8x128x64xf32, #tpu.memory_space<vmem>>, vector<1x1x128x64xf32>
    %43 = vector.shape_cast %42 : vector<1x1x128x64xf32> to vector<128x64xf32>
    %cst_25 = arith.constant dense<0.000000e+00> : vector<32x64xf32>
    %44 = tpu.matmul %15, %43, %cst_25 {dimension_numbers = #tpu.dot_dimension_numbers<[1], [0], [0], [1], [0, 0, 1, 1], [], []>} : vector<32x128xf32>, vector<128x64xf32>, vector<32x64xf32> -> vector<32x64xf32>
    %45 = vector.extract_strided_slice %11 {offsets = [0, 3], sizes = [32, 1], strides = [1, 1]} : vector<32x8xf32> to vector<32x1xf32>
    %46 = vector.broadcast %45 : vector<32x1xf32> to vector<32x64xf32>
    %47 = arith.mulf %44, %46 : vector<32x64xf32>
    %48 = arith.addf %40, %47 : vector<32x64xf32>
    %49 = arith.index_cast %arg1 : i32 to index
    %c4 = arith.constant 4 : index
    %c0_26 = arith.constant 0 : index
    %c0_27 = arith.constant 0 : index
    %50 = vector.load %arg8[%49, %c4, %c0_26, %c0_27] : memref<2x8x128x64xf32, #tpu.memory_space<vmem>>, vector<1x1x128x64xf32>
    %51 = vector.shape_cast %50 : vector<1x1x128x64xf32> to vector<128x64xf32>
    %cst_28 = arith.constant dense<0.000000e+00> : vector<32x64xf32>
    %52 = tpu.matmul %15, %51, %cst_28 {dimension_numbers = #tpu.dot_dimension_numbers<[1], [0], [0], [1], [0, 0, 1, 1], [], []>} : vector<32x128xf32>, vector<128x64xf32>, vector<32x64xf32> -> vector<32x64xf32>
    %53 = vector.extract_strided_slice %11 {offsets = [0, 4], sizes = [32, 1], strides = [1, 1]} : vector<32x8xf32> to vector<32x1xf32>
    %54 = vector.broadcast %53 : vector<32x1xf32> to vector<32x64xf32>
    %55 = arith.mulf %52, %54 : vector<32x64xf32>
    %56 = arith.addf %48, %55 : vector<32x64xf32>
    %57 = arith.index_cast %arg1 : i32 to index
    %c5 = arith.constant 5 : index
    %c0_29 = arith.constant 0 : index
    %c0_30 = arith.constant 0 : index
    %58 = vector.load %arg8[%57, %c5, %c0_29, %c0_30] : memref<2x8x128x64xf32, #tpu.memory_space<vmem>>, vector<1x1x128x64xf32>
    %59 = vector.shape_cast %58 : vector<1x1x128x64xf32> to vector<128x64xf32>
    %cst_31 = arith.constant dense<0.000000e+00> : vector<32x64xf32>
    %60 = tpu.matmul %15, %59, %cst_31 {dimension_numbers = #tpu.dot_dimension_numbers<[1], [0], [0], [1], [0, 0, 1, 1], [], []>} : vector<32x128xf32>, vector<128x64xf32>, vector<32x64xf32> -> vector<32x64xf32>
    %61 = vector.extract_strided_slice %11 {offsets = [0, 5], sizes = [32, 1], strides = [1, 1]} : vector<32x8xf32> to vector<32x1xf32>
    %62 = vector.broadcast %61 : vector<32x1xf32> to vector<32x64xf32>
    %63 = arith.mulf %60, %62 : vector<32x64xf32>
    %64 = arith.addf %56, %63 : vector<32x64xf32>
    %65 = arith.index_cast %arg1 : i32 to index
    %c6 = arith.constant 6 : index
    %c0_32 = arith.constant 0 : index
    %c0_33 = arith.constant 0 : index
    %66 = vector.load %arg8[%65, %c6, %c0_32, %c0_33] : memref<2x8x128x64xf32, #tpu.memory_space<vmem>>, vector<1x1x128x64xf32>
    %67 = vector.shape_cast %66 : vector<1x1x128x64xf32> to vector<128x64xf32>
    %cst_34 = arith.constant dense<0.000000e+00> : vector<32x64xf32>
    %68 = tpu.matmul %15, %67, %cst_34 {dimension_numbers = #tpu.dot_dimension_numbers<[1], [0], [0], [1], [0, 0, 1, 1], [], []>} : vector<32x128xf32>, vector<128x64xf32>, vector<32x64xf32> -> vector<32x64xf32>
    %69 = vector.extract_strided_slice %11 {offsets = [0, 6], sizes = [32, 1], strides = [1, 1]} : vector<32x8xf32> to vector<32x1xf32>
    %70 = vector.broadcast %69 : vector<32x1xf32> to vector<32x64xf32>
    %71 = arith.mulf %68, %70 : vector<32x64xf32>
    %72 = arith.addf %64, %71 : vector<32x64xf32>
    %73 = arith.index_cast %arg1 : i32 to index
    %c7 = arith.constant 7 : index
    %c0_35 = arith.constant 0 : index
    %c0_36 = arith.constant 0 : index
    %74 = vector.load %arg8[%73, %c7, %c0_35, %c0_36] : memref<2x8x128x64xf32, #tpu.memory_space<vmem>>, vector<1x1x128x64xf32>
    %75 = vector.shape_cast %74 : vector<1x1x128x64xf32> to vector<128x64xf32>
    %cst_37 = arith.constant dense<0.000000e+00> : vector<32x64xf32>
    %76 = tpu.matmul %15, %75, %cst_37 {dimension_numbers = #tpu.dot_dimension_numbers<[1], [0], [0], [1], [0, 0, 1, 1], [], []>} : vector<32x128xf32>, vector<128x64xf32>, vector<32x64xf32> -> vector<32x64xf32>
    %77 = vector.extract_strided_slice %11 {offsets = [0, 7], sizes = [32, 1], strides = [1, 1]} : vector<32x8xf32> to vector<32x1xf32>
    %78 = vector.broadcast %77 : vector<32x1xf32> to vector<32x64xf32>
    %79 = arith.mulf %76, %78 : vector<32x64xf32>
    %80 = arith.addf %72, %79 : vector<32x64xf32>
    %81 = arith.index_cast %arg1 : i32 to index
    %c0_38 = arith.constant 0 : index
    %c0_39 = arith.constant 0 : index
    %82 = vector.load %arg9[%81, %c0_38, %c0_39] : memref<2x16x64xf32, #tpu.memory_space<vmem>>, vector<1x16x64xf32>
    %83 = vector.shape_cast %82 : vector<1x16x64xf32> to vector<16x64xf32>
    %84 = vector.shape_cast %83 : vector<16x64xf32> to vector<1x16x64xf32>
    %85 = vector.shape_cast %84 : vector<1x16x64xf32> to vector<1x16x64xf32>
    %86 = vector.broadcast %85 : vector<1x16x64xf32> to vector<2x16x64xf32>
    %87 = vector.shape_cast %86 : vector<2x16x64xf32> to vector<32x64xf32>
    %88 = arith.addf %80, %87 : vector<32x64xf32>
    %89 = arith.negf %88 : vector<32x64xf32>
    %90 = math.exp %89 : vector<32x64xf32>
    %cst_40 = arith.constant 1.000000e+00 : f32
    %91 = vector.broadcast %cst_40 : f32 to vector<32x64xf32>
    %92 = arith.addf %91, %90 : vector<32x64xf32>
    %93 = arith.divf %91, %92 : vector<32x64xf32>
    %94 = vector.extract_strided_slice %93 {offsets = [0, 0], sizes = [32, 32], strides = [1, 1]} : vector<32x64xf32> to vector<32x32xf32>
    %95 = vector.extract_strided_slice %93 {offsets = [0, 32], sizes = [32, 32], strides = [1, 1]} : vector<32x64xf32> to vector<32x32xf32>
    %96 = vector.shape_cast %6 : vector<2x16x32xf32> to vector<32x32xf32>
    %97 = arith.mulf %94, %96 : vector<32x32xf32>
    %98 = vector.shape_cast %97 : vector<32x32xf32> to vector<2x16x32xf32>
    "tpu.trace_start"() <{level = 10 : i32, message = "bnm,bmi->bni"}> : () -> ()
    %cst_41 = arith.constant dense<0.000000e+00> : vector<2x16x32xf32>
    %99 = tpu.matmul %3, %98, %cst_41 {dimension_numbers = #tpu.dot_dimension_numbers<[2], [1], [1], [2], [0, 0, 0, 1, 1, 2], [0], [0]>} : vector<2x16x16xf32>, vector<2x16x32xf32>, vector<2x16x32xf32> -> vector<2x16x32xf32>
    "tpu.trace_stop"() : () -> ()
    %100 = vector.extract_strided_slice %13 {offsets = [0, 0, 0], sizes = [2, 16, 32], strides = [1, 1, 1]} : vector<2x16x64xf32> to vector<2x16x32xf32>
    %101 = tpu.concatenate %4, %98, %100, %99 in 2 : vector<2x16x32xf32>, vector<2x16x32xf32>, vector<2x16x32xf32>, vector<2x16x32xf32> -> vector<2x16x128xf32>
    %102 = vector.shape_cast %101 : vector<2x16x128xf32> to vector<32x128xf32>
    %cst_42 = arith.constant 0.000000e+00 : f32
    %103 = vector.broadcast %cst_42 : f32 to vector<32x32xf32>
    %104 = arith.index_cast %arg1 : i32 to index
    %c0_43 = arith.constant 0 : index
    %c0_44 = arith.constant 0 : index
    %c0_45 = arith.constant 0 : index
    %105 = vector.load %arg10[%104, %c0_43, %c0_44, %c0_45] : memref<2x8x128x32xf32, #tpu.memory_space<vmem>>, vector<1x1x128x32xf32>
    %106 = vector.shape_cast %105 : vector<1x1x128x32xf32> to vector<128x32xf32>
    %cst_46 = arith.constant dense<0.000000e+00> : vector<32x32xf32>
    %107 = tpu.matmul %102, %106, %cst_46 {dimension_numbers = #tpu.dot_dimension_numbers<[1], [0], [0], [1], [0, 0, 1, 1], [], []>} : vector<32x128xf32>, vector<128x32xf32>, vector<32x32xf32> -> vector<32x32xf32>
    %108 = vector.extract_strided_slice %11 {offsets = [0, 0], sizes = [32, 1], strides = [1, 1]} : vector<32x8xf32> to vector<32x1xf32>
    %109 = vector.broadcast %108 : vector<32x1xf32> to vector<32x32xf32>
    %110 = arith.mulf %107, %109 : vector<32x32xf32>
    %111 = arith.addf %103, %110 : vector<32x32xf32>
    %112 = arith.index_cast %arg1 : i32 to index
    %c1_47 = arith.constant 1 : index
    %c0_48 = arith.constant 0 : index
    %c0_49 = arith.constant 0 : index
    %113 = vector.load %arg10[%112, %c1_47, %c0_48, %c0_49] : memref<2x8x128x32xf32, #tpu.memory_space<vmem>>, vector<1x1x128x32xf32>
    %114 = vector.shape_cast %113 : vector<1x1x128x32xf32> to vector<128x32xf32>
    %cst_50 = arith.constant dense<0.000000e+00> : vector<32x32xf32>
    %115 = tpu.matmul %102, %114, %cst_50 {dimension_numbers = #tpu.dot_dimension_numbers<[1], [0], [0], [1], [0, 0, 1, 1], [], []>} : vector<32x128xf32>, vector<128x32xf32>, vector<32x32xf32> -> vector<32x32xf32>
    %116 = vector.extract_strided_slice %11 {offsets = [0, 1], sizes = [32, 1], strides = [1, 1]} : vector<32x8xf32> to vector<32x1xf32>
    %117 = vector.broadcast %116 : vector<32x1xf32> to vector<32x32xf32>
    %118 = arith.mulf %115, %117 : vector<32x32xf32>
    %119 = arith.addf %111, %118 : vector<32x32xf32>
    %120 = arith.index_cast %arg1 : i32 to index
    %c2_51 = arith.constant 2 : index
    %c0_52 = arith.constant 0 : index
    %c0_53 = arith.constant 0 : index
    %121 = vector.load %arg10[%120, %c2_51, %c0_52, %c0_53] : memref<2x8x128x32xf32, #tpu.memory_space<vmem>>, vector<1x1x128x32xf32>
    %122 = vector.shape_cast %121 : vector<1x1x128x32xf32> to vector<128x32xf32>
    %cst_54 = arith.constant dense<0.000000e+00> : vector<32x32xf32>
    %123 = tpu.matmul %102, %122, %cst_54 {dimension_numbers = #tpu.dot_dimension_numbers<[1], [0], [0], [1], [0, 0, 1, 1], [], []>} : vector<32x128xf32>, vector<128x32xf32>, vector<32x32xf32> -> vector<32x32xf32>
    %124 = vector.extract_strided_slice %11 {offsets = [0, 2], sizes = [32, 1], strides = [1, 1]} : vector<32x8xf32> to vector<32x1xf32>
    %125 = vector.broadcast %124 : vector<32x1xf32> to vector<32x32xf32>
    %126 = arith.mulf %123, %125 : vector<32x32xf32>
    %127 = arith.addf %119, %126 : vector<32x32xf32>
    %128 = arith.index_cast %arg1 : i32 to index
    %c3_55 = arith.constant 3 : index
    %c0_56 = arith.constant 0 : index
    %c0_57 = arith.constant 0 : index
    %129 = vector.load %arg10[%128, %c3_55, %c0_56, %c0_57] : memref<2x8x128x32xf32, #tpu.memory_space<vmem>>, vector<1x1x128x32xf32>
    %130 = vector.shape_cast %129 : vector<1x1x128x32xf32> to vector<128x32xf32>
    %cst_58 = arith.constant dense<0.000000e+00> : vector<32x32xf32>
    %131 = tpu.matmul %102, %130, %cst_58 {dimension_numbers = #tpu.dot_dimension_numbers<[1], [0], [0], [1], [0, 0, 1, 1], [], []>} : vector<32x128xf32>, vector<128x32xf32>, vector<32x32xf32> -> vector<32x32xf32>
    %132 = vector.extract_strided_slice %11 {offsets = [0, 3], sizes = [32, 1], strides = [1, 1]} : vector<32x8xf32> to vector<32x1xf32>
    %133 = vector.broadcast %132 : vector<32x1xf32> to vector<32x32xf32>
    %134 = arith.mulf %131, %133 : vector<32x32xf32>
    %135 = arith.addf %127, %134 : vector<32x32xf32>
    %136 = arith.index_cast %arg1 : i32 to index
    %c4_59 = arith.constant 4 : index
    %c0_60 = arith.constant 0 : index
    %c0_61 = arith.constant 0 : index
    %137 = vector.load %arg10[%136, %c4_59, %c0_60, %c0_61] : memref<2x8x128x32xf32, #tpu.memory_space<vmem>>, vector<1x1x128x32xf32>
    %138 = vector.shape_cast %137 : vector<1x1x128x32xf32> to vector<128x32xf32>
    %cst_62 = arith.constant dense<0.000000e+00> : vector<32x32xf32>
    %139 = tpu.matmul %102, %138, %cst_62 {dimension_numbers = #tpu.dot_dimension_numbers<[1], [0], [0], [1], [0, 0, 1, 1], [], []>} : vector<32x128xf32>, vector<128x32xf32>, vector<32x32xf32> -> vector<32x32xf32>
    %140 = vector.extract_strided_slice %11 {offsets = [0, 4], sizes = [32, 1], strides = [1, 1]} : vector<32x8xf32> to vector<32x1xf32>
    %141 = vector.broadcast %140 : vector<32x1xf32> to vector<32x32xf32>
    %142 = arith.mulf %139, %141 : vector<32x32xf32>
    %143 = arith.addf %135, %142 : vector<32x32xf32>
    %144 = arith.index_cast %arg1 : i32 to index
    %c5_63 = arith.constant 5 : index
    %c0_64 = arith.constant 0 : index
    %c0_65 = arith.constant 0 : index
    %145 = vector.load %arg10[%144, %c5_63, %c0_64, %c0_65] : memref<2x8x128x32xf32, #tpu.memory_space<vmem>>, vector<1x1x128x32xf32>
    %146 = vector.shape_cast %145 : vector<1x1x128x32xf32> to vector<128x32xf32>
    %cst_66 = arith.constant dense<0.000000e+00> : vector<32x32xf32>
    %147 = tpu.matmul %102, %146, %cst_66 {dimension_numbers = #tpu.dot_dimension_numbers<[1], [0], [0], [1], [0, 0, 1, 1], [], []>} : vector<32x128xf32>, vector<128x32xf32>, vector<32x32xf32> -> vector<32x32xf32>
    %148 = vector.extract_strided_slice %11 {offsets = [0, 5], sizes = [32, 1], strides = [1, 1]} : vector<32x8xf32> to vector<32x1xf32>
    %149 = vector.broadcast %148 : vector<32x1xf32> to vector<32x32xf32>
    %150 = arith.mulf %147, %149 : vector<32x32xf32>
    %151 = arith.addf %143, %150 : vector<32x32xf32>
    %152 = arith.index_cast %arg1 : i32 to index
    %c6_67 = arith.constant 6 : index
    %c0_68 = arith.constant 0 : index
    %c0_69 = arith.constant 0 : index
    %153 = vector.load %arg10[%152, %c6_67, %c0_68, %c0_69] : memref<2x8x128x32xf32, #tpu.memory_space<vmem>>, vector<1x1x128x32xf32>
    %154 = vector.shape_cast %153 : vector<1x1x128x32xf32> to vector<128x32xf32>
    %cst_70 = arith.constant dense<0.000000e+00> : vector<32x32xf32>
    %155 = tpu.matmul %102, %154, %cst_70 {dimension_numbers = #tpu.dot_dimension_numbers<[1], [0], [0], [1], [0, 0, 1, 1], [], []>} : vector<32x128xf32>, vector<128x32xf32>, vector<32x32xf32> -> vector<32x32xf32>
    %156 = vector.extract_strided_slice %11 {offsets = [0, 6], sizes = [32, 1], strides = [1, 1]} : vector<32x8xf32> to vector<32x1xf32>
    %157 = vector.broadcast %156 : vector<32x1xf32> to vector<32x32xf32>
    %158 = arith.mulf %155, %157 : vector<32x32xf32>
    %159 = arith.addf %151, %158 : vector<32x32xf32>
    %160 = arith.index_cast %arg1 : i32 to index
    %c7_71 = arith.constant 7 : index
    %c0_72 = arith.constant 0 : index
    %c0_73 = arith.constant 0 : index
    %161 = vector.load %arg10[%160, %c7_71, %c0_72, %c0_73] : memref<2x8x128x32xf32, #tpu.memory_space<vmem>>, vector<1x1x128x32xf32>
    %162 = vector.shape_cast %161 : vector<1x1x128x32xf32> to vector<128x32xf32>
    %cst_74 = arith.constant dense<0.000000e+00> : vector<32x32xf32>
    %163 = tpu.matmul %102, %162, %cst_74 {dimension_numbers = #tpu.dot_dimension_numbers<[1], [0], [0], [1], [0, 0, 1, 1], [], []>} : vector<32x128xf32>, vector<128x32xf32>, vector<32x32xf32> -> vector<32x32xf32>
    %164 = vector.extract_strided_slice %11 {offsets = [0, 7], sizes = [32, 1], strides = [1, 1]} : vector<32x8xf32> to vector<32x1xf32>
    %165 = vector.broadcast %164 : vector<32x1xf32> to vector<32x32xf32>
    %166 = arith.mulf %163, %165 : vector<32x32xf32>
    %167 = arith.addf %159, %166 : vector<32x32xf32>
    %168 = arith.index_cast %arg1 : i32 to index
    %c0_75 = arith.constant 0 : index
    %c0_76 = arith.constant 0 : index
    %169 = vector.load %arg11[%168, %c0_75, %c0_76] : memref<2x16x32xf32, #tpu.memory_space<vmem>>, vector<1x16x32xf32>
    %170 = vector.shape_cast %169 : vector<1x16x32xf32> to vector<16x32xf32>
    %171 = vector.shape_cast %170 : vector<16x32xf32> to vector<1x16x32xf32>
    %172 = vector.shape_cast %171 : vector<1x16x32xf32> to vector<1x16x32xf32>
    %173 = vector.broadcast %172 : vector<1x16x32xf32> to vector<2x16x32xf32>
    %174 = vector.shape_cast %173 : vector<2x16x32xf32> to vector<32x32xf32>
    %175 = arith.addf %167, %174 : vector<32x32xf32>
    %176 = math.tanh %175 : vector<32x32xf32>
    %177 = arith.mulf %95, %96 : vector<32x32xf32>
    %cst_77 = arith.constant 1.000000e+00 : f32
    %178 = vector.broadcast %cst_77 : f32 to vector<32x32xf32>
    %179 = arith.subf %178, %95 : vector<32x32xf32>
    %180 = arith.mulf %179, %176 : vector<32x32xf32>
    %181 = arith.addf %177, %180 : vector<32x32xf32>
    %182 = vector.shape_cast %181 : vector<32x32xf32> to vector<2x16x32xf32>
    %c0_78 = arith.constant 0 : index
    %c0_79 = arith.constant 0 : index
    %c0_80 = arith.constant 0 : index
    %c0_81 = arith.constant 0 : index
    %183 = vector.load %arg12[%c0_78, %c0_79, %c0_80, %c0_81] : memref<1x2x16x32xf32, #tpu.memory_space<vmem>>, vector<1x2x16x32xf32>
    %184 = vector.shape_cast %183 : vector<1x2x16x32xf32> to vector<2x16x32xf32>
    %185 = vector.shape_cast %182 : vector<2x16x32xf32> to vector<1x2x16x32xf32>
    tpu.vector_store %arg12[%c0_78, %c0_79, %c0_80, %c0_81], %185 {strides = array<i32>} : memref<1x2x16x32xf32, #tpu.memory_space<vmem>>, vector<1x2x16x32xf32>,
    %c1_i32 = arith.constant 1 : i32
    %186 = arith.addi %arg1, %c1_i32 : i32
    %c2_i32 = arith.constant 2 : i32
    %187 = arith.cmpi slt, %186, %c2_i32 : i32
    %188 = arith.extui %187 : i1 to i32
    %c0_i32_82 = arith.constant 0 : i32
    %189 = arith.cmpi ne, %188, %c0_i32_82 : i32
    scf.if %189 {
      %c0_83 = arith.constant 0 : index
      %c0_84 = arith.constant 0 : index
      %c0_85 = arith.constant 0 : index
      %190 = vector.load %arg14[%c0_83, %c0_84, %c0_85] : memref<2x16x32xf32, #tpu.memory_space<vmem>>, vector<2x16x32xf32>
      tpu.vector_store %arg14[%c0_83, %c0_84, %c0_85], %182 {strides = array<i32>} : memref<2x16x32xf32, #tpu.memory_space<vmem>>, vector<2x16x32xf32>,
    } else {
    }
    return
  }
  func.func @transform_0(%arg0: i32, %arg1: i32) -> (i32, i32, i32) {
    %c0_i32 = arith.constant 0 : i32
    %c0_i32_0 = arith.constant 0 : i32
    %c0_i32_1 = arith.constant 0 : i32
    return %arg0, %c0_i32, %c0_i32_0 : i32, i32, i32
  }
  func.func @transform_1(%arg0: i32, %arg1: i32) -> (i32, i32) {
    %c0_i32 = arith.constant 0 : i32
    %c0_i32_0 = arith.constant 0 : i32
    return %arg0, %c0_i32 : i32, i32
  }
  func.func @transform_2(%arg0: i32, %arg1: i32) -> (i32, i32) {
    %c0_i32 = arith.constant 0 : i32
    %c0_i32_0 = arith.constant 0 : i32
    return %arg0, %c0_i32 : i32, i32
  }
  func.func @transform_3(%arg0: i32, %arg1: i32) -> (i32, i32) {
    %c0_i32 = arith.constant 0 : i32
    %c0_i32_0 = arith.constant 0 : i32
    %c0_i32_1 = arith.constant 0 : i32
    return %c0_i32, %c0_i32_0 : i32, i32
  }
  func.func @transform_4(%arg0: i32, %arg1: i32) -> (i32, i32) {
    %c0_i32 = arith.constant 0 : i32
    %c0_i32_0 = arith.constant 0 : i32
    %c0_i32_1 = arith.constant 0 : i32
    return %c0_i32, %c0_i32_0 : i32, i32
  }
  func.func @transform_5(%arg0: i32, %arg1: i32) -> (i32, i32, i32, i32) {
    %c0_i32 = arith.constant 0 : i32
    %c0_i32_0 = arith.constant 0 : i32
    %c0_i32_1 = arith.constant 0 : i32
    return %arg1, %arg0, %c0_i32, %c0_i32_0 : i32, i32, i32, i32
  }
  func.func @transform_6(%arg0: i32, %arg1: i32) -> (i32, i32, i32, i32) {
    %c0_i32 = arith.constant 0 : i32
    %c0_i32_0 = arith.constant 0 : i32
    %c0_i32_1 = arith.constant 0 : i32
    %c0_i32_2 = arith.constant 0 : i32
    %c0_i32_3 = arith.constant 0 : i32
    return %c0_i32, %c0_i32_0, %c0_i32_1, %c0_i32_2 : i32, i32, i32, i32
  }
  func.func @transform_7(%arg0: i32, %arg1: i32) -> (i32, i32, i32) {
    %c0_i32 = arith.constant 0 : i32
    %c0_i32_0 = arith.constant 0 : i32
    %c0_i32_1 = arith.constant 0 : i32
    %c0_i32_2 = arith.constant 0 : i32
    return %c0_i32, %c0_i32_0, %c0_i32_1 : i32, i32, i32
  }
  func.func @transform_8(%arg0: i32, %arg1: i32) -> (i32, i32, i32, i32) {
    %c0_i32 = arith.constant 0 : i32
    %c0_i32_0 = arith.constant 0 : i32
    %c0_i32_1 = arith.constant 0 : i32
    %c0_i32_2 = arith.constant 0 : i32
    %c0_i32_3 = arith.constant 0 : i32
    return %c0_i32, %c0_i32_0, %c0_i32_1, %c0_i32_2 : i32, i32, i32, i32
  }
  func.func @transform_9(%arg0: i32, %arg1: i32) -> (i32, i32, i32) {
    %c0_i32 = arith.constant 0 : i32
    %c0_i32_0 = arith.constant 0 : i32
    %c0_i32_1 = arith.constant 0 : i32
    %c0_i32_2 = arith.constant 0 : i32
    return %c0_i32, %c0_i32_0, %c0_i32_1 : i32, i32, i32
  }
  func.func @transform_10(%arg0: i32, %arg1: i32) -> (i32, i32, i32, i32) {
    %c0_i32 = arith.constant 0 : i32
    %c0_i32_0 = arith.constant 0 : i32
    %c0_i32_1 = arith.constant 0 : i32
    return %arg1, %arg0, %c0_i32, %c0_i32_0 : i32, i32, i32, i32
  }
}

</mosaic_0001>

<bundles_post_ra>
// kernel: tpu_custom_call.1
= control target key start
LH: loop header
LB: loop body
LE: loop exit
PB: predicated region body
PF: predicated region fallthrough
CT: control target
= control target key end

     0   :  { %15 = vsyncpa [#allocation5], 0  ;;  %s6227_s0 = inlined_call_operand.vmem [shape: f32[2,16,32], index: 0, kind: input, shape index: {}]   ;;  %s6228_s1 = inlined_call_operand.vmem [shape: f32[2,8], index: 1, kind: input, shape index: {}]   ;;  %s6229_s2 = inlined_call_operand.vmem [shape: f32[2,8], index: 2, kind: input, shape index: {}]   ;;  %s6230_s3 = inlined_call_operand.vmem [shape: f32[16,8], index: 3, kind: input, shape index: {}]   ;;  %s6231_s4 = inlined_call_operand.vmem [shape: f32[8,16], index: 4, kind: input, shape index: {}]   ;;  %s6232_s5 = inlined_call_operand.vmem [shape: f32[2,2,16,32], index: 5, kind: input, shape index: {}]   ;;  %s6233_s6 = inlined_call_operand.vmem [shape: f32[2,8,128,64], index: 6, kind: input, shape index: {}]   ;;  %s6234_s7 = inlined_call_operand.vmem [shape: f32[2,16,64], index: 7, kind: input, shape index: {}]   ;;  %s6235_s8 = inlined_call_operand.vmem [shape: f32[2,8,128,32], index: 8, kind: input, shape index: {}]   ;;  %s6236_s9 = inlined_call_operand.vmem [shape: f32[2,16,32], index: 9, kind: input, shape index: {}]   ;;  %s6237_s10 = inlined_call_operand.hbm [shape: f32[2,2,16,32], index: 10, kind: output, shape index: {}]  }
   0x1   :  { %17 = vsyncpa [#allocation5 + $0x1], 0  ;;  %s5412_s13 = smov 0   ;;  %s5414_s14 = smov 0  }
   0x2   :  { %s5416_s15 = smov 0   ;;  %s5418_s16 = smov 0  }
   0x3   :  { %s5420_s17 = smov 0   ;;  %s5422_s18 = smov 0  }
   0x4 LB: > { %s3294_s19 = sadd.s32 4294967295, %s5340_s18   ;;  %s3295_s20 = sadd.s32 4294967294, %s5340_s18   ;;  %s5340_s18 = sphi %s5422_s18, %s23_s18   ;;  %s5336_s17 = sphi %s5420_s17, %s6246_s17   ;;  %s5332_s16 = sphi %s5418_s16, %s6245_s16   ;;  %s5328_s15 = sphi %s5416_s15, %s6244_s15   ;;  %s5324_s14 = sphi %s5414_s14, %s6243_s14   ;;  %s5320_s13 = sphi %s5412_s13, %s6242_s13  }
   0x5   : > { %s32_s21 = sadd.s32 1, %s5336_s17  ;;  %s276_s22 = sadd.s32 1, %s5328_s15 }
   0x6   : > { %p33_p0 = scmp.ge.s32.totalorder %s32_s21, 2  ;;  %p286_p1 = scmp.ne.s32.totalorder %s5328_s15, %s5324_s14 }
   0x7   : > { %p287_p2 = scmp.eq.s32.totalorder %s3294_s19, 1  ;;  %p292_p3 = scmp.ne.s32.totalorder %s5324_s14, %s5320_s13 }
   0x8   : > { %s6248_s21 = smov (%p33_p0, %s32_s21), 0  ;;  %p293_p5 = scmp.eq.s32.totalorder %s3295_s20, 1 }
   0x9   : > { %p5452_p4 = por %p287_p2, %p286_p1  ;;  %s271_s24 = ssub.s32 %s5336_s17, %s6248_s21 }
   0xa   : > { %p3301_p6 = scmp.ge.s32.totalorder %s5340_s18, 1  ;;  %p274_p7 = scmp.eq.s32.totalorder %s271_s24, 0 }
   0xb   : > { %p5459_p8 = por %p293_p5, %p292_p3  ;;  %p367_p9 = scmp.lt.s32.totalorder %s5340_s18, 3 }
   0xc   : > { %s5465_s26 = scalar_select %p274_p7, %s5328_s15, %s276_s22  }
   0xd   : > { %p368_p10 = pnand %p3301_p6, %p367_p9 }
   0xe   : > { %s6238_s27 = sand.u32 (!%p368_p10), 1, %s5324_s14   ;;  %p440_p11 = scmp.lt.s32.totalorder (!%p368_p10), %s5332_s16, 1 }
   0xf   : > { %371 = sbr.rel (%p368_p10) target bundleno = 2446 (0x98e), region = 60  ;;  %s3302_s28 = sshll.u32 (!%p368_p10), %s6238_s27, 5 }
  0x10   : > { %s5477_s20 = scalar_lea.vmem (!%p368_p10), [#allocation4], %s3302_s28  ;;  %p3305_p12 = scmp.ne.s32.totalorder (!%p368_p10), %s5332_s16, 0 }
  0x16   : > { %s441_s29 = scalar_select %p440_p11, %s5332_s16, 1 }
  0x17   : > { %454 = sbr.rel (%p3305_p12) target bundleno = 702 (0x2be), region = 64  ;;  %v472_v0 = vlaneseq (!%p3305_p12)  ;;  %v5342_v1 = vmov (!%p3305_p12), 1966171168   ;;  %v456_v5 = vld [vmem:[%s6229_s2] sm:$0x3] (!%p3305_p12)  ;;  %vm519_vm0 = vcmask (!%p3305_p12), 64512  }
  0x18   : > { %s3569_s30 = sshll.u32 %s441_s29, 5  ;;  %v470_v2 = vunpack.c.l.s4 (!%p3305_p12), %v5342_v1  ;;  %v3306_v4 = vld.sshfl [vmem:[%s6228_s1] sm:$0x11 pattern:$0x75316420] (!%p3305_p12)  ;;  %v458_v22 = vld [vmem:[%s6230_s3 + $0x8] sm:$0xff] (!%p3305_p12) }
  0x19   : > { %s5475_s19 = scalar_lea.vmem %s6232_s5, %s3569_s30  ;;  %v473_v3 = vshrl.u32 (!%p3305_p12), %v472_v0, 7  ;;  %v468_v7 = vcombine.high (!%p3305_p12), %v3306_v4, %v3306_v4  ;;  %v457_v15 = vld [vmem:[%s6230_s3] sm:$0xff] (!%p3305_p12)  ;;  %vm686_vm1 = vcmask (!%p3305_p12), 130048   ;;  %vm739_vm2 = vcmask (!%p3305_p12), 261120  }
  0x1a   : > { %v471_v6 = vunpack.c.0.s8 (!%p3305_p12), %v470_v2  ;;  %v459_v24 = vld [vmem:[%s6231_s4] sm:$0xff] (!%p3305_p12) }
  0x1b   : > { %v485_v8 = vsub.s32 (!%p3305_p12), 0, %v473_v3  ;;  %v510_v9 = vsub.s32 (!%p3305_p12), 1, %v473_v3  ;;  %v735_v2 = vld [vmem:[%s6227_s0] sm:$0xff] (!%p3305_p12) }
  0x1c   : > { %v474_v10 = vsub.s32 (!%p3305_p12), %v471_v6, %v473_v3  ;;  %v736_v3 = vld [vmem:[%s6227_s0 + $0x8] sm:$0xff] (!%p3305_p12)  ;;  %740 = vst.msk [vmem:[#allocation3] sm:$0xff] (!%p3305_p12), %vm739_vm2, %v735_v2 }
  0x1d   : > { %v504_v11 = vrot.slane (!%p3305_p12), %v456_v5, %v485_v8  ;;  %v511_v14 = vrot.slane (!%p3305_p12), %v456_v5, %v510_v9  ;;  %v738_v5 = vld [vmem:[%s6227_s0 + $0x18] sm:$0xff] (!%p3305_p12)  ;;  %741 = vst.msk [vmem:[#allocation3 + $0x8] sm:$0xff] (!%p3305_p12), %vm739_vm2, %v736_v3 }
  0x1e   : > { %v475_v12 = vrot.slane %v3306_v4, %v474_v10  ;;  %v482_v13 = vrot.slane %v468_v7, %v474_v10  ;;  %v737_v4 = vld [vmem:[%s6227_s0 + $0x10] sm:$0xff]  ;;  %743 = vst.msk [vmem:[#allocation3 + $0x18] sm:$0xff] %vm739_vm2, %v738_v5 }
  0x1f   : > { %506 = vbcast.lane.b32.xlu0 %v504_v11, 256  ;;  %742 = vst.msk [vmem:[#allocation3 + $0x10] sm:$0xff] %vm739_vm2, %v737_v4 }
  0x20   : > { %v486_v16 = vrot.slane %v475_v12, %v485_v8  ;;  %v490_v17 = vrot.slane %v482_v13, %v485_v8 }
  0x22   : > { %v493_v18 = vmul.f32 %v486_v16, %v457_v15  ;;  %v495_v19 = vmul.f32 %v490_v17, %v457_v15  ;;  %v494_v23 = vmul.f32 %v486_v16, %v458_v22  ;;  %v496_v27 = vmul.f32 %v490_v17, %v458_v22 }
  0x23   : > { %513 = vbcast.lane.b32.xlu0 %v511_v14, 256 }
  0x24   : > { %5156 = vtanh.f32 %v493_v18 }
  0x25   : > { %5158 = vtanh.f32 %v495_v19 }
  0x26   : > { %5160 = vtanh.f32 %v494_v23 }
  0x2e   : > { %v5157_v20 = vpop.eup %5156 }
  0x2f   : > { %v5159_v21 = vpop.eup %5158  ;;  %3915 = vmatprep.mubr.msk.f32.mxu0 %vm519_vm0, %v5157_v20 }
  0x30   : > { %3920 = vmatprep.mubr.msk.f32.mxu1 %vm519_vm0, %v5159_v21  ;;  %v5161_v30 = vpop.eup %5160 }
  0x91   : > { %v507_v25 = vpop.permute.xlu0 %506 }
  0x92   : > { %v515_v26 = vmul.f32 %v507_v25, %v459_v24 }
  0x94   : > { %5162 = vtanh.f32 %v515_v26 }
  0x95   : > { %v514_v28 = vpop.permute.xlu0 %513  ;;  %5164 = vtanh.f32 %v496_v27 }
  0x96   : > { %v516_v29 = vmul.f32 %v514_v28, %v459_v24 }
  0x98   : > { %5166 = vtanh.f32 %v516_v29 }
  0x9e   : > { %v5163_v31 = vpop.eup %5162 }
  0x9f   : > { %3913 = vmatprep.subr.mxu0 %v5163_v31  ;;  %v5165_v32 = vpop.eup %5164 }
  0xa0   : > { %3914 = vmatpush3.msra.mxu0 %v5163_v31 }
  0xa1   : > { %3916 = vmatmul.mubr.msk.f32.vlgmr.msra.gmra.mrb[0].mxu0 %vm519_vm0, %v5161_v30 }
  0xa2   : > { %v5167_v33 = vpop.eup %5166 }
  0xa3   : > { %3918 = vmatprep.subr.mxu1 %v5167_v33 }
  0xa4   : > { %3919 = vmatpush3.msra.mxu1 %v5167_v33 }
  0xa5   : > { %3921 = vmatmul.mubr.msk.f32.vlgmr.msra.gmra.mrb[0].mxu1 %vm519_vm0, %v5165_v32 }
 0x174   : > { %v3917_v34 = vpop.f32.mrb[0].mxu0 }
 0x175   : > { %v683_v35 = vmax.f32 %v3917_v34, 0.0  ;;  %v592_v36 = vpop.f32.mrb[1].mxu0 }
 0x176   : > { %v682_v37 = vmax.f32 %v592_v36, 0.0 }
 0x177   : > { %v690_v38 = vsel %vm686_vm1, %v683_v35, -inf }
 0x178   : > { %691 = vmax.xlane.f32.xlu1 %v690_v38  ;;  %v3922_v39 = vpop.f32.mrb[0].mxu1  ;;  %v687_v43 = vsel %vm686_vm1, %v682_v37, -inf }
 0x179   : > { %v685_v40 = vmax.f32 %v3922_v39, 0.0  ;;  %v673_v41 = vpop.f32.mrb[1].mxu1 }
 0x17a   : > { %v684_v42 = vmax.f32 %v673_v41, 0.0 }
 0x17b   : > { %v696_v45 = vsel %vm686_vm1, %v685_v40, -inf }
 0x17c   : > { %688 = vmax.xlane.f32.xlu1 %v687_v43  ;;  %v693_v44 = vsel %vm686_vm1, %v684_v42, -inf }
 0x17d   : > { %694 = vmax.xlane.f32.xlu0 %v693_v44 }
 0x180   : > { %697 = vmax.xlane.f32.xlu1 %v696_v45 }
 0x205   : > { %v692_v46 = vpop.xlane.xlu1 %691 }
 0x206   : > { %v700_v47 = vsub.f32 %v683_v35, %v692_v46 }
 0x208   : > { %v705_v48 = vmul.f32 1.442695, %v700_v47 }
 0x209   : > { %v689_v49 = vpop.xlane.xlu1 %688 }
 0x20a   : > { %5168 = vpow2.f32 %v705_v48  ;;  %v699_v50 = vsub.f32 %v682_v37, %v689_v49  ;;  %v695_v51 = vpop.xlane.xlu0 %694 }
 0x20b   : > { %v701_v52 = vsub.f32 %v684_v42, %v695_v51 }
 0x20c   : > { %v703_v53 = vmul.f32 1.442695, %v699_v50 }
 0x20d   : > { %v707_v54 = vmul.f32 1.442695, %v701_v52  ;;  %v698_v55 = vpop.xlane.xlu1 %697 }
 0x20e   : > { %5170 = vpow2.f32 %v703_v53  ;;  %v702_v56 = vsub.f32 %v685_v40, %v698_v55 }
 0x20f   : > { %5172 = vpow2.f32 %v707_v54 }
 0x210   : > { %v709_v57 = vmul.f32 1.442695, %v702_v56 }
 0x212   : > { %5174 = vpow2.f32 %v709_v57 }
 0x214   : > { %v5169_v58 = vpop.eup %5168 }
 0x215   : > { %v714_v59 = vsel %vm686_vm1, %v5169_v58, 0.0 }
 0x216   : > { %715 = vadd.xlane.f32.xlu1 %v714_v59 }
 0x218   : > { %v5171_v60 = vpop.eup %5170 }
 0x219   : > { %v711_v61 = vsel %vm686_vm1, %v5171_v60, 0.0  ;;  %v5173_v62 = vpop.eup %5172 }
 0x21a   : > { %712 = vadd.xlane.f32.xlu1 %v711_v61  ;;  %v717_v63 = vsel %vm686_vm1, %v5173_v62, 0.0 }
 0x21c   : > { %v5175_v0 = vpop.eup %5174 }
 0x21d   : > { %v720_v1 = vsel %vm686_vm1, %v5175_v0, 0.0 }
 0x21e   : > { %718 = vadd.xlane.f32.xlu1 %v717_v63 }
 0x222   : > { %721 = vadd.xlane.f32.xlu1 %v720_v1 }
 0x2a3   : > { %v716_v6 = vpop.xlane.xlu1 %715 }
 0x2a4   : > { %5176 = vrcp.f32 %v716_v6 }
 0x2a7   : > { %v713_v7 = vpop.xlane.xlu1 %712 }
 0x2a8   : > { %5178 = vrcp.f32 %v713_v7 }
 0x2ab   : > { %v719_v8 = vpop.xlane.xlu1 %718 }
 0x2ac   : > { %5180 = vrcp.f32 %v719_v8 }
 0x2ae   : > { %v5177_v9 = vpop.eup %5176 }
 0x2af   : > { %v728_v10 = vmul.f32 %v5177_v9, %v5169_v58  ;;  %v722_v11 = vpop.xlane.xlu1 %721 }
 0x2b0   : > { %5182 = vrcp.f32 %v722_v11 }
 0x2b1   : > { %732 = vst.msk [vmem:[#allocation2 + $0x8] sm:$0xff] %vm686_vm1, %v728_v10 }
 0x2b2   : > { %v5179_v12 = vpop.eup %5178 }
 0x2b3   : > { %v727_v13 = vmul.f32 %v5179_v12, %v5171_v60 }
 0x2b5   : > { %731 = vst.msk [vmem:[#allocation2] sm:$0xff] %vm686_vm1, %v727_v13 }
 0x2b6   : > { %v5181_v14 = vpop.eup %5180 }
 0x2b7   : > { %v729_v15 = vmul.f32 %v5181_v14, %v5173_v62 }
 0x2b9   : > { %733 = vst.msk [vmem:[#allocation2 + $0x10] sm:$0xff] %vm686_vm1, %v729_v15 }
 0x2ba   : > { %v5183_v16 = vpop.eup %5182 }
 0x2bb   : > { %v730_v17 = vmul.f32 %v5183_v16, %v5175_v0 }
 0x2bd   : > { %734 = vst.msk [vmem:[#allocation2 + $0x18] sm:$0xff] %vm686_vm1, %v730_v17 }
 0x2be PF: > { %v754_v18 = vld [vmem:[%s5475_s19 + $0x10] sm:$0xff]  ;;  %v752_v19 = vld [vmem:[%s5475_s19] sm:$0xff]  ;;  %vm779_vm3 = vcmask 130048   ;;  %s5343_s24 = smov 32   ;;  %v755_v20 = vld [vmem:[%s5475_s19 + $0x18] sm:$0xff]  ;;  %vm774_vm4 = vcmask 261120  }
 0x2bf   : > { %766 = vrot.lane.b32.xlu1 %v754_v18, %s5343_s24  ;;  %762 = vrot.lane.b32.xlu0 %v752_v19, %s5343_s24  ;;  %v753_v21 = vld [vmem:[%s5475_s19 + $0x8] sm:$0xff]  ;;  %v5529_v22 = vld [vmem:[#allocation2] sm:$0xff]  ;;  %v750_v25 = vld [vmem:[#allocation3 + $0x10] sm:$0xff]  ;;  %s3315_s29 = sshll.u32 %s5332_s16, 10  ;;  %s5344_s11 = smov 64   ;;  %vm958_vm5 = vcmask 523264  }
 0x2c0   : > { %3927 = vmatprep.mubr.msk.f32.mxu0 %vm779_vm3, %v5529_v22  ;;  %v5533_v23 = vld [vmem:[#allocation2 + $0x10] sm:$0xff]  ;;  %v745_v38 = vld [vmem:[#allocation2 + $0x8] sm:$0xff]  ;;  %s5575_s27 = scalar_lea.vmem %s6233_s6, %s3315_s29  ;;  %vm2143_vm6 = vcmask 785408  }
 0x2c1   : > { %3934 = vmatprep.mubr.msk.f32.mxu1 %vm779_vm3, %v5533_v23  ;;  %v965_v40 = vld [vmem:[%s5575_s27] sm:$0xff]  ;;  %v966_v41 = vld [vmem:[%s5575_s27 + $0x8] sm:$0xff]  ;;  %v967_v45 = vld [vmem:[%s5575_s27 + $0x10] sm:$0xff] }
 0x2c2   : > { %v3317_v42 = vld [vmem:[%s5575_s27 + $0x80] sm:$0xff]  ;;  %v4567_v43 = vpack.c.bf16 %v966_v41, %v965_v40  ;;  %v3318_v44 = vld [vmem:[%s5575_s27 + $0x88] sm:$0xff]  ;;  %v968_v46 = vld [vmem:[%s5575_s27 + $0x18] sm:$0xff] }
 0x2c3   : > { %768 = vrot.lane.b32.xlu1 %v755_v20, %s5343_s24  ;;  %764 = vrot.lane.b32.xlu0 %v753_v21, %s5343_s24  ;;  %v748_v27 = vld [vmem:[#allocation3] sm:$0xff]  ;;  %v4599_v47 = vpack.c.bf16 %v3318_v44, %v3317_v42  ;;  %v4571_v48 = vpack.c.bf16 %v968_v46, %v967_v45  ;;  %v3319_v49 = vld [vmem:[%s5575_s27 + $0x90] sm:$0xff]  ;;  %v3320_v50 = vld [vmem:[%s5575_s27 + $0x98] sm:$0xff] }
 0x2c4   : > { %v749_v29 = vld [vmem:[#allocation3 + $0x8] sm:$0xff]  ;;  %v747_v39 = vld [vmem:[#allocation2 + $0x18] sm:$0xff]  ;;  %v969_v51 = vld [vmem:[%s5575_s27 + $0x20] sm:$0xff]  ;;  %v4603_v52 = vpack.c.bf16 %v3320_v50, %v3319_v49  ;;  %v5346_v49 = vmov 1   ;;  %v5347_v50 = vmov 2  }
 0x2c5   : > { %v751_v28 = vld [vmem:[#allocation3 + $0x18] sm:$0xff]  ;;  %v970_v53 = vld [vmem:[%s5575_s27 + $0x28] sm:$0xff]  ;;  %v3321_v54 = vld [vmem:[%s5575_s27 + $0xa0] sm:$0xff] }
 0x2c6   : > { %v3322_v55 = vld [vmem:[%s5575_s27 + $0xa8] sm:$0xff]  ;;  %v4575_v56 = vpack.c.bf16 %v970_v53, %v969_v51  ;;  %v971_v58 = vld [vmem:[%s5575_s27 + $0x30] sm:$0xff]  ;;  %v972_v59 = vld [vmem:[%s5575_s27 + $0x38] sm:$0xff]  ;;  %v5348_v51 = vmov 3   ;;  %v5350_v53 = vmov 6  }
 0x2c7   : > { %v4607_v57 = vpack.c.bf16 %v3322_v55, %v3321_v54  ;;  %v3323_v60 = vld [vmem:[%s5575_s27 + $0xb0] sm:$0xff]  ;;  %v3324_v61 = vld [vmem:[%s5575_s27 + $0xb8] sm:$0xff]  ;;  %v4579_v62 = vpack.c.bf16 %v972_v59, %v971_v58  ;;  %v973_v0 = vld [vmem:[%s5575_s27 + $0x40] sm:$0xff]  ;;  %v5351_v54 = vmov 7   ;;  %v5352_v55 = vmov 5  }
 0x2c8   : > { %v4611_v63 = vpack.c.bf16 %v3324_v61, %v3323_v60  ;;  %v974_v1 = vld [vmem:[%s5575_s27 + $0x48] sm:$0xff]  ;;  %v3325_v2 = vld [vmem:[%s5575_s27 + $0xc0] sm:$0xff]  ;;  %v975_v6 = vld [vmem:[%s5575_s27 + $0x50] sm:$0xff] }
 0x2c9   : > { %v3326_v3 = vld [vmem:[%s5575_s27 + $0xc8] sm:$0xff]  ;;  %v4583_v4 = vpack.c.bf16 %v974_v1, %v973_v0  ;;  %v976_v7 = vld [vmem:[%s5575_s27 + $0x58] sm:$0xff]  ;;  %v3327_v8 = vld [vmem:[%s5575_s27 + $0xd0] sm:$0xff] }
 0x2ca   : > { %v4615_v5 = vpack.c.bf16 %v3326_v3, %v3325_v2  ;;  %v3328_v9 = vld [vmem:[%s5575_s27 + $0xd8] sm:$0xff]  ;;  %v4587_v10 = vpack.c.bf16 %v976_v7, %v975_v6  ;;  %v977_v12 = vld [vmem:[%s5575_s27 + $0x60] sm:$0xff]  ;;  %v978_v13 = vld [vmem:[%s5575_s27 + $0x68] sm:$0xff] }
 0x2cb   : > { %v4619_v11 = vpack.c.bf16 %v3328_v9, %v3327_v8  ;;  %v3329_v14 = vld [vmem:[%s5575_s27 + $0xe0] sm:$0xff]  ;;  %v3330_v15 = vld [vmem:[%s5575_s27 + $0xe8] sm:$0xff]  ;;  %v4591_v16 = vpack.c.bf16 %v978_v13, %v977_v12  ;;  %v3331_v18 = vld [vmem:[%s5575_s27 + $0xf0] sm:$0xff] }
 0x2cc   : > { %v4623_v17 = vpack.c.bf16 %v3330_v15, %v3329_v14  ;;  %v3332_v19 = vld [vmem:[%s5575_s27 + $0xf8] sm:$0xff]  ;;  %v979_v21 = vld [vmem:[%s5575_s27 + $0x70] sm:$0xff]  ;;  %v5622_v46 = vld [vmem:[%s6230_s3] sm:$0xff] }
 0x2cd   : > { %v4627_v20 = vpack.c.bf16 %v3332_v19, %v3331_v18  ;;  %v3336_v58 = vld [vmem:[%s5575_s27 + $0x110] sm:$0xff]  ;;  %v3337_v61 = vld [vmem:[%s5575_s27 + $0x118] sm:$0xff]  ;;  %v3338_v6 = vld [vmem:[%s5575_s27 + $0x120] sm:$0xff] }
 0x2ce   : > { %v3356_v7 = vld [vmem:[%s5575_s27 + $0x1a8] sm:$0xff]  ;;  %v3340_v9 = vld [vmem:[%s5575_s27 + $0x130] sm:$0xff]  ;;  %v3341_v12 = vld [vmem:[%s5575_s27 + $0x138] sm:$0xff] }
 0x2cf   : > { %v3357_v13 = vld [vmem:[%s5575_s27 + $0x1b0] sm:$0xff]  ;;  %v3358_v14 = vld [vmem:[%s5575_s27 + $0x1b8] sm:$0xff]  ;;  %v3359_v18 = vld [vmem:[%s5575_s27 + $0x1c0] sm:$0xff] }
 0x2d0   : > { %v4675_v15 = vpack.c.bf16 %v3358_v14, %v3357_v13  ;;  %v3360_v19 = vld [vmem:[%s5575_s27 + $0x1c8] sm:$0xff]  ;;  %v3391_v13 = vld [vmem:[%s5575_s27 + $0x2b0] sm:$0xff]  ;;  %v3392_v14 = vld [vmem:[%s5575_s27 + $0x2b8] sm:$0xff] }
 0x331   : > { %v5539_v24 = vpop.permute.xlu1 %766  ;;  %v5541_v26 = vpop.permute.xlu0 %762 }
 0x332   : > { %v5545_v30 = vsel %vm774_vm4, %v750_v25, %v5539_v24  ;;  %v5553_v33 = vsel %vm774_vm4, %v748_v27, %v5541_v26  ;;  %v980_v25 = vld [vmem:[%s5575_s27 + $0x78] sm:$0xff] }
 0x333   : > { %v4595_v27 = vpack.c.bf16 %v980_v25, %v979_v21  ;;  %v4679_v21 = vpack.c.bf16 %v3360_v19, %v3359_v18  ;;  %v3344_v25 = vld [vmem:[%s5575_s27 + $0x150] sm:$0xff]  ;;  %v3393_v18 = vld [vmem:[%s5575_s27 + $0x2c0] sm:$0xff]  ;;  %v3394_v19 = vld [vmem:[%s5575_s27 + $0x2c8] sm:$0xff] }
 0x335   : > { %v5547_v31 = vpop.permute.xlu1 %768  ;;  %v5549_v32 = vpop.permute.xlu0 %764 }
 0x336   : > { %v5557_v34 = vsel %vm774_vm4, %v751_v28, %v5547_v31  ;;  %v5561_v35 = vsel %vm774_vm4, %v749_v29, %v5549_v32  ;;  %v3334_v28 = vld [vmem:[%s5575_s27 + $0x100] sm:$0xff]  ;;  %v3335_v29 = vld [vmem:[%s5575_s27 + $0x108] sm:$0xff] }
 0x337   : > { %v4559_v36 = vpack.c.bf16 %v5561_v35, %v5553_v33  ;;  %v4563_v37 = vpack.c.bf16 %v5557_v34, %v5545_v30 }
 0x339   : > { %4560 = vmatprep.subr.bf16.mxu0 %v4559_v36  ;;  %4564 = vmatprep.subr.bf16.mxu1 %v4563_v37 }
 0x33a   : > { %4562 = vmatpush3.bf16.msra.mxu0 %v4559_v36  ;;  %4566 = vmatpush3.bf16.msra.mxu1 %v4563_v37  ;;  %v3351_v36 = vld [vmem:[%s5575_s27 + $0x180] sm:$0xff]  ;;  %v5612_v37 = vpack.c.bf16 %v3335_v29, %v3334_v28  ;;  %v3361_v28 = vld [vmem:[%s5575_s27 + $0x1d0] sm:$0xff]  ;;  %v3362_v29 = vld [vmem:[%s5575_s27 + $0x1d8] sm:$0xff] }
 0x33b   : > { %4568 = vmatprep.subr.bf16.mxu0 %v4567_v43  ;;  %4600 = vmatprep.subr.bf16.mxu1 %v4599_v47 }
 0x33d   : > { %3928 = vmatmul.mubr.msk.f32.vlgmr.msra.gmra.mrb[0].mxu0 %vm779_vm3, %v745_v38  ;;  %3935 = vmatmul.mubr.msk.f32.vlgmr.msra.gmra.mrb[0].mxu1 %vm779_vm3, %v747_v39  ;;  %v3352_v38 = vld [vmem:[%s5575_s27 + $0x188] sm:$0xff] }
 0x33e   : > { %4570 = vmatpush3.bf16.msra.mxu0 %v4567_v43  ;;  %4602 = vmatpush3.bf16.msra.mxu1 %v4599_v47  ;;  %v5615_v39 = vpack.c.bf16 %v3352_v38, %v3351_v36  ;;  %v5345_v47 = vmov 0   ;;  %v3346_v38 = vld [vmem:[%s5575_s27 + $0x160] sm:$0xff] }
 0x33f   : > { %4572 = vmatprep.subr.bf16.mxu0 %v4571_v48  ;;  %4604 = vmatprep.subr.bf16.mxu1 %v4603_v52 }
 0x340   : > { %5194 = vset.pattern.permute.xlu0 %v5345_v47  ;;  %5195 = vset.pattern.permute.xlu1 %v5345_v47  ;;  %v3365_v47 = vld [vmem:[%s5575_s27 + $0x1f0] sm:$0xff] }
 0x342   : > { %4574 = vmatpush3.bf16.msra.mxu0 %v4571_v48  ;;  %4606 = vmatpush3.bf16.msra.mxu1 %v4603_v52  ;;  %v5627_v48 = vld [vmem:[%s6230_s3 + $0x8] sm:$0xff]  ;;  %v5349_v52 = vmov 4  }
 0x343   : > { %4576 = vmatprep.subr.bf16.mxu0 %v4575_v56  ;;  %4608 = vmatprep.subr.bf16.mxu1 %v4607_v57 }
 0x346   : > { %4578 = vmatpush3.bf16.msra.mxu0 %v4575_v56  ;;  %4610 = vmatpush3.bf16.msra.mxu1 %v4607_v57 }
 0x347   : > { %4580 = vmatprep.subr.bf16.mxu0 %v4579_v62  ;;  %4612 = vmatprep.subr.bf16.mxu1 %v4611_v63 }
 0x34a   : > { %4582 = vmatpush3.bf16.msra.mxu0 %v4579_v62  ;;  %4614 = vmatpush3.bf16.msra.mxu1 %v4611_v63  ;;  %v3353_v62 = vld [vmem:[%s5575_s27 + $0x190] sm:$0xff]  ;;  %v3354_v63 = vld [vmem:[%s5575_s27 + $0x198] sm:$0xff] }
 0x34b   : > { %4584 = vmatprep.subr.bf16.mxu0 %v4583_v4  ;;  %4616 = vmatprep.subr.bf16.mxu1 %v4615_v5 }
 0x34e   : > { %4586 = vmatpush3.bf16.msra.mxu0 %v4583_v4  ;;  %4618 = vmatpush3.bf16.msra.mxu1 %v4615_v5  ;;  %v4635_v4 = vpack.c.bf16 %v3337_v61, %v3336_v58  ;;  %v4667_v5 = vpack.c.bf16 %v3354_v63, %v3353_v62  ;;  %v3370_v58 = vld [vmem:[%s5575_s27 + $0x210] sm:$0xff]  ;;  %v3371_v61 = vld [vmem:[%s5575_s27 + $0x218] sm:$0xff] }
 0x34f   : > { %4588 = vmatprep.subr.bf16.mxu0 %v4587_v10  ;;  %4620 = vmatprep.subr.bf16.mxu1 %v4619_v11  ;;  %v3387_v62 = vld [vmem:[%s5575_s27 + $0x290] sm:$0xff]  ;;  %v3388_v63 = vld [vmem:[%s5575_s27 + $0x298] sm:$0xff] }
 0x352   : > { %4590 = vmatpush3.bf16.msra.mxu0 %v4587_v10  ;;  %4622 = vmatpush3.bf16.msra.mxu1 %v4619_v11 }
 0x353   : > { %4592 = vmatprep.subr.bf16.mxu0 %v4591_v16  ;;  %4624 = vmatprep.subr.bf16.mxu1 %v4623_v17 }
 0x356   : > { %4594 = vmatpush3.bf16.msra.mxu0 %v4591_v16  ;;  %4626 = vmatpush3.bf16.msra.mxu1 %v4623_v17  ;;  %v3342_v16 = vld [vmem:[%s5575_s27 + $0x140] sm:$0xff]  ;;  %v3343_v17 = vld [vmem:[%s5575_s27 + $0x148] sm:$0xff] }
 0x357   : > { %4628 = vmatprep.subr.bf16.mxu1 %v4627_v20  ;;  %4596 = vmatprep.subr.bf16.mxu0 %v4595_v27 }
 0x35a   : > { %4630 = vmatpush3.bf16.msra.mxu1 %v4627_v20  ;;  %4598 = vmatpush3.bf16.msra.mxu0 %v4595_v27  ;;  %v4647_v20 = vpack.c.bf16 %v3343_v17, %v3342_v16  ;;  %v3345_v27 = vld [vmem:[%s5575_s27 + $0x158] sm:$0xff]  ;;  %v3376_v16 = vld [vmem:[%s5575_s27 + $0x240] sm:$0xff]  ;;  %v3377_v17 = vld [vmem:[%s5575_s27 + $0x248] sm:$0xff] }
 0x35b   : > { %4632 = vmatprep.subr.bf16.mxu0 %v5612_v37  ;;  %4664 = vmatprep.subr.bf16.mxu1 %v5615_v39  ;;  %v4651_v36 = vpack.c.bf16 %v3345_v27, %v3344_v25  ;;  %v3378_v25 = vld [vmem:[%s5575_s27 + $0x250] sm:$0xff]  ;;  %v3379_v27 = vld [vmem:[%s5575_s27 + $0x258] sm:$0xff] }
 0x410   : > { %v3929_v40 = vpop.f32.mrb[0].mxu0  ;;  %v3936_v41 = vpop.f32.mrb[0].mxu1 }
 0x411   : > { %v852_v42 = vpop.f32.mrb[1].mxu0  ;;  %v933_v43 = vpop.f32.mrb[1].mxu1 }
 0x412   : > { %v5184_v44 = vpack.i.bf16 %v3929_v40, %v852_v42  ;;  %v5189_v45 = vpack.i.bf16 %v3936_v41, %v933_v43  ;;  %v3363_v40 = vld [vmem:[%s5575_s27 + $0x1e0] sm:$0xff]  ;;  %v3364_v41 = vld [vmem:[%s5575_s27 + $0x1e8] sm:$0xff] }
 0x413   : > { %v4687_v43 = vpack.c.bf16 %v3364_v41, %v3363_v40  ;;  %v3397_v40 = vld [vmem:[%s5575_s27 + $0x2e0] sm:$0xff]  ;;  %v3398_v41 = vld [vmem:[%s5575_s27 + $0x2e8] sm:$0xff] }
 0x414   : > { %5190 = vrot.lane.b32.xlu1 %v5189_v45, %s5344_s11  ;;  %5185 = vrot.lane.b32.xlu0 %v5184_v44, %s5344_s11  ;;  %v3348_v44 = vld [vmem:[%s5575_s27 + $0x170] sm:$0xff]  ;;  %v3349_v45 = vld [vmem:[%s5575_s27 + $0x178] sm:$0xff] }
 0x418   : > { %1068 = vperm.xlu0 %5194, %v5622_v46   ;;  %1073 = vperm.xlu1 %5195, %v5627_v48  }
 0x41c   : > { %5197 = vset.pattern.permute.xlu0 %v5346_v49  ;;  %5196 = vset.pattern.permute.xlu1 %v5346_v49  ;;  %v3366_v49 = vld [vmem:[%s5575_s27 + $0x1f8] sm:$0xff] }
 0x41d   : > { %1192 = vperm.xlu0 %5197, %v5627_v48   ;;  %1188 = vperm.xlu1 %5196, %v5622_v46  }
 0x421   : > { %5198 = vset.pattern.permute.xlu1 %v5347_v50  ;;  %5199 = vset.pattern.permute.xlu0 %v5348_v51  ;;  %v4691_v50 = vpack.c.bf16 %v3366_v49, %v3365_v47  ;;  %v3399_v47 = vld [vmem:[%s5575_s27 + $0x2f0] sm:$0xff]  ;;  %v3400_v49 = vld [vmem:[%s5575_s27 + $0x2f8] sm:$0xff] }
 0x422   : > { %1307 = vperm.xlu1 %5198, %v5622_v46   ;;  %1426 = vperm.xlu0 %5199, %v5622_v46  }
 0x426   : > { %1311 = vperm.xlu1 %5198, %v5627_v48   ;;  %5202 = vset.pattern.permute.xlu0 %v5349_v52 }
 0x427   : > { %1549 = vperm.xlu0 %5202, %v5627_v48  }
 0x42a   : > { %5200 = vset.pattern.permute.xlu1 %v5348_v51  ;;  %v3368_v51 = vld [vmem:[%s5575_s27 + $0x200] sm:$0xff] }
 0x42b   : > { %1430 = vperm.xlu1 %5200, %v5627_v48   ;;  %5204 = vset.pattern.permute.xlu0 %v5350_v53 }
 0x42c   : > { %1783 = vperm.xlu0 %5204, %v5622_v46  }
 0x42f   : > { %5201 = vset.pattern.permute.xlu1 %v5349_v52  ;;  %v3369_v52 = vld [vmem:[%s5575_s27 + $0x208] sm:$0xff] }
 0x430   : > { %1545 = vperm.xlu1 %5201, %v5622_v46   ;;  %5207 = vset.pattern.permute.xlu0 %v5351_v54 }
 0x431   : > { %1906 = vperm.xlu0 %5207, %v5627_v48  }
 0x434   : > { %5203 = vset.pattern.permute.xlu1 %v5352_v55  ;;  %v3386_v55 = vld [vmem:[%s5575_s27 + $0x288] sm:$0xff] }
 0x435   : > { %1664 = vperm.xlu1 %5203, %v5622_v46  }
 0x439   : > { %1668 = vperm.xlu1 %5203, %v5627_v48  }
 0x43d   : > { %5205 = vset.pattern.permute.xlu1 %v5350_v53  ;;  %v3385_v53 = vld [vmem:[%s5575_s27 + $0x280] sm:$0xff] }
 0x43e   : > { %1787 = vperm.xlu1 %5205, %v5627_v48   ;;  %v4659_v48 = vpack.c.bf16 %v3349_v45, %v3348_v44  ;;  %v3382_v44 = vld [vmem:[%s5575_s27 + $0x270] sm:$0xff]  ;;  %v3383_v45 = vld [vmem:[%s5575_s27 + $0x278] sm:$0xff] }
 0x442   : > { %5206 = vset.pattern.permute.xlu1 %v5351_v54  ;;  %v4727_v54 = vpack.c.bf16 %v3386_v55, %v3385_v53  ;;  %v3419_v53 = vld [vmem:[%s5575_s27 + $0x380] sm:$0xff]  ;;  %v3420_v55 = vld [vmem:[%s5575_s27 + $0x388] sm:$0xff] }
 0x443   : > { %1902 = vperm.xlu1 %5206, %v5622_v46   ;;  %v4695_v46 = vpack.c.bf16 %v3369_v52, %v3368_v51  ;;  %v3402_v51 = vld [vmem:[%s5575_s27 + $0x300] sm:$0xff]  ;;  %v3403_v52 = vld [vmem:[%s5575_s27 + $0x308] sm:$0xff] }
 0x486   : > { %v5643_v56 = vpop.permute.xlu1 %5190  ;;  %v5645_v57 = vpop.permute.xlu0 %5185 }
 0x487   : > { %v5188_v59 = vunpack.i.h.bf16 %v5645_v57  ;;  %v5187_v60 = vunpack.i.l.bf16 %v5645_v57  ;;  %v5192_v0 = vunpack.i.l.bf16 %v5643_v56  ;;  %v5193_v3 = vunpack.i.h.bf16 %v5643_v56 }
 0x489   : > { %v5659_v1 = vsel %vm958_vm5, %v5561_v35, %v5188_v59  ;;  %v5665_v2 = vsel %vm958_vm5, %v5553_v33, %v5187_v60  ;;  %v3339_v35 = vld [vmem:[%s5575_s27 + $0x128] sm:$0xff]  ;;  %v3355_v33 = vld [vmem:[%s5575_s27 + $0x1a0] sm:$0xff]  ;;  %v5680_v8 = vsel %vm958_vm5, %v5545_v30, %v5192_v0  ;;  %v5691_v10 = vsel %vm958_vm5, %v5557_v34, %v5193_v3 }
 0x48a   : > { %3969 = vmatprep.mubr.f32.mxu0 %v5665_v2  ;;  %4007 = vmatprep.mubr.f32.mxu1 %v5665_v2  ;;  %v4639_v30 = vpack.c.bf16 %v3339_v35, %v3338_v6  ;;  %v4671_v11 = vpack.c.bf16 %v3356_v7, %v3355_v33  ;;  %v4643_v34 = vpack.c.bf16 %v3341_v12, %v3340_v9  ;;  %v3372_v6 = vld [vmem:[%s5575_s27 + $0x220] sm:$0xff]  ;;  %v3373_v35 = vld [vmem:[%s5575_s27 + $0x228] sm:$0xff]  ;;  %v3375_v12 = vld [vmem:[%s5575_s27 + $0x238] sm:$0xff] }
 0x48b   : > { %3970 = vmatmul.mubr.f32.vlgmr.msra.gmra.mrb[2].mxu0 %v5659_v1  ;;  %4008 = vmatmul.mubr.f32.vlgmr.msra.gmra.mrb[2].mxu1 %v5659_v1  ;;  %v3389_v33 = vld [vmem:[%s5575_s27 + $0x2a0] sm:$0xff]  ;;  %v3390_v7 = vld [vmem:[%s5575_s27 + $0x2a8] sm:$0xff]  ;;  %v4703_v9 = vpack.c.bf16 %v3373_v35, %v3372_v6 }
 0x48c   : > { %4634 = vmatpush3.bf16.msra.mxu0 %v5612_v37  ;;  %4666 = vmatpush3.bf16.msra.mxu1 %v5615_v39  ;;  %v4683_v37 = vpack.c.bf16 %v3362_v29, %v3361_v28  ;;  %v3347_v39 = vld [vmem:[%s5575_s27 + $0x168] sm:$0xff]  ;;  %v3395_v28 = vld [vmem:[%s5575_s27 + $0x2d0] sm:$0xff]  ;;  %v3396_v29 = vld [vmem:[%s5575_s27 + $0x2d8] sm:$0xff] }
 0x48d   : > { %3972 = vmatprep.mubr.f32.mxu0 %v5680_v8  ;;  %4010 = vmatprep.mubr.f32.mxu1 %v5680_v8  ;;  %v4655_v42 = vpack.c.bf16 %v3347_v39, %v3346_v38  ;;  %v3380_v38 = vld [vmem:[%s5575_s27 + $0x260] sm:$0xff]  ;;  %v3381_v39 = vld [vmem:[%s5575_s27 + $0x268] sm:$0xff] }
 0x48e   : > { %4636 = vmatprep.subr.bf16.mxu0 %v4635_v4  ;;  %4668 = vmatprep.subr.bf16.mxu1 %v4667_v5  ;;  %v3406_v6 = vld [vmem:[%s5575_s27 + $0x320] sm:$0xff]  ;;  %v3407_v35 = vld [vmem:[%s5575_s27 + $0x328] sm:$0xff] }
 0x48f   : > { %3973 = vmatmul.mubr.f32.gmra.mrb[4].mxu0 %v5691_v10  ;;  %4011 = vmatmul.mubr.f32.gmra.mrb[4].mxu1 %v5691_v10 }
 0x490   : > { %4638 = vmatpush3.bf16.msra.mxu0 %v4635_v4  ;;  %4670 = vmatpush3.bf16.msra.mxu1 %v4667_v5  ;;  %v4699_v4 = vpack.c.bf16 %v3371_v61, %v3370_v58  ;;  %v4731_v5 = vpack.c.bf16 %v3388_v63, %v3387_v62  ;;  %v3404_v58 = vld [vmem:[%s5575_s27 + $0x310] sm:$0xff]  ;;  %v3405_v61 = vld [vmem:[%s5575_s27 + $0x318] sm:$0xff] }
 0x491   : > { %4045 = vmatprep.mubr.f32.mxu0 %v5665_v2  ;;  %4083 = vmatprep.mubr.f32.mxu1 %v5665_v2  ;;  %v3421_v62 = vld [vmem:[%s5575_s27 + $0x390] sm:$0xff]  ;;  %v3422_v63 = vld [vmem:[%s5575_s27 + $0x398] sm:$0xff] }
 0x492   : > { %4640 = vmatprep.subr.bf16.mxu0 %v4639_v30  ;;  %4672 = vmatprep.subr.bf16.mxu1 %v4671_v11 }
 0x494   : > { %4642 = vmatpush3.bf16.msra.mxu0 %v4639_v30  ;;  %4674 = vmatpush3.bf16.msra.mxu1 %v4671_v11  ;;  %v4735_v30 = vpack.c.bf16 %v3390_v7, %v3389_v33  ;;  %v3374_v11 = vld [vmem:[%s5575_s27 + $0x230] sm:$0xff]  ;;  %v3423_v33 = vld [vmem:[%s5575_s27 + $0x3a0] sm:$0xff]  ;;  %v3424_v7 = vld [vmem:[%s5575_s27 + $0x3a8] sm:$0xff] }
 0x495   : > { %4644 = vmatprep.subr.bf16.mxu0 %v4643_v34  ;;  %4676 = vmatprep.subr.bf16.mxu1 %v4675_v15 }
 0x498   : > { %4646 = vmatpush3.bf16.msra.mxu0 %v4643_v34  ;;  %4678 = vmatpush3.bf16.msra.mxu1 %v4675_v15  ;;  %v4707_v34 = vpack.c.bf16 %v3375_v12, %v3374_v11  ;;  %v4739_v15 = vpack.c.bf16 %v3392_v14, %v3391_v13  ;;  %v3408_v11 = vld [vmem:[%s5575_s27 + $0x330] sm:$0xff]  ;;  %v3409_v12 = vld [vmem:[%s5575_s27 + $0x338] sm:$0xff] }
 0x499   : > { %4648 = vmatprep.subr.bf16.mxu0 %v4647_v20  ;;  %4680 = vmatprep.subr.bf16.mxu1 %v4679_v21  ;;  %v3425_v13 = vld [vmem:[%s5575_s27 + $0x3b0] sm:$0xff]  ;;  %v3426_v14 = vld [vmem:[%s5575_s27 + $0x3b8] sm:$0xff] }
 0x49c   : > { %4650 = vmatpush3.bf16.msra.mxu0 %v4647_v20  ;;  %4682 = vmatpush3.bf16.msra.mxu1 %v4679_v21  ;;  %v4711_v20 = vpack.c.bf16 %v3377_v17, %v3376_v16  ;;  %v4743_v21 = vpack.c.bf16 %v3394_v19, %v3393_v18  ;;  %v3410_v16 = vld [vmem:[%s5575_s27 + $0x340] sm:$0xff]  ;;  %v3411_v17 = vld [vmem:[%s5575_s27 + $0x348] sm:$0xff] }
 0x49d   : > { %4652 = vmatprep.subr.bf16.mxu0 %v4651_v36  ;;  %4684 = vmatprep.subr.bf16.mxu1 %v4683_v37  ;;  %v3427_v18 = vld [vmem:[%s5575_s27 + $0x3c0] sm:$0xff]  ;;  %v3428_v19 = vld [vmem:[%s5575_s27 + $0x3c8] sm:$0xff] }
 0x4a0   : > { %4654 = vmatpush3.bf16.msra.mxu0 %v4651_v36  ;;  %4686 = vmatpush3.bf16.msra.mxu1 %v4683_v37  ;;  %v4715_v36 = vpack.c.bf16 %v3379_v27, %v3378_v25  ;;  %v4747_v37 = vpack.c.bf16 %v3396_v29, %v3395_v28  ;;  %v3413_v25 = vld [vmem:[%s5575_s27 + $0x358] sm:$0xff]  ;;  %v3429_v27 = vld [vmem:[%s5575_s27 + $0x3d0] sm:$0xff] }
 0x4a1   : > { %4656 = vmatprep.subr.bf16.mxu0 %v4655_v42  ;;  %4688 = vmatprep.subr.bf16.mxu1 %v4687_v43  ;;  %v3430_v28 = vld [vmem:[%s5575_s27 + $0x3d8] sm:$0xff] }
 0x4a4   : > { %4658 = vmatpush3.bf16.msra.mxu0 %v4655_v42  ;;  %4690 = vmatpush3.bf16.msra.mxu1 %v4687_v43  ;;  %v4719_v42 = vpack.c.bf16 %v3381_v39, %v3380_v38  ;;  %v4751_v43 = vpack.c.bf16 %v3398_v41, %v3397_v40  ;;  %v3415_v38 = vld [vmem:[%s5575_s27 + $0x368] sm:$0xff]  ;;  %v3431_v39 = vld [vmem:[%s5575_s27 + $0x3e0] sm:$0xff] }
 0x4a5   : > { %4660 = vmatprep.subr.bf16.mxu0 %v4659_v48  ;;  %4692 = vmatprep.subr.bf16.mxu1 %v4691_v50  ;;  %v3432_v40 = vld [vmem:[%s5575_s27 + $0x3e8] sm:$0xff] }
 0x4a8   : > { %4662 = vmatpush3.bf16.msra.mxu0 %v4659_v48  ;;  %4694 = vmatpush3.bf16.msra.mxu1 %v4691_v50  ;;  %v4723_v48 = vpack.c.bf16 %v3383_v45, %v3382_v44  ;;  %v4755_v50 = vpack.c.bf16 %v3400_v49, %v3399_v47  ;;  %v3417_v44 = vld [vmem:[%s5575_s27 + $0x378] sm:$0xff]  ;;  %v3433_v45 = vld [vmem:[%s5575_s27 + $0x3f0] sm:$0xff] }
 0x4a9   : > { %4696 = vmatprep.subr.bf16.mxu0 %v4695_v46  ;;  %4728 = vmatprep.subr.bf16.mxu1 %v4727_v54  ;;  %v3434_v47 = vld [vmem:[%s5575_s27 + $0x3f8] sm:$0xff] }
 0x4ab   : > { %4046 = vmatmul.mubr.f32.vlgmr.msra.gmra.mrb[6].mxu0 %v5659_v1  ;;  %4084 = vmatmul.mubr.f32.vlgmr.msra.gmra.mrb[6].mxu1 %v5659_v1 }
 0x4ac   : > { %4048 = vmatprep.mubr.f32.mxu0 %v5680_v8  ;;  %4086 = vmatprep.mubr.f32.mxu1 %v5680_v8 }
 0x4ad   : > { %4698 = vmatpush3.bf16.msra.mxu0 %v4695_v46  ;;  %4730 = vmatpush3.bf16.msra.mxu1 %v4727_v54  ;;  %v4759_v46 = vpack.c.bf16 %v3403_v52, %v3402_v51  ;;  %v4791_v54 = vpack.c.bf16 %v3420_v55, %v3419_v53  ;;  %v5813_v51 = vpop.permute.xlu1 %1073 }
 0x4ae   : > { %4700 = vmatprep.subr.bf16.mxu0 %v4699_v4  ;;  %4732 = vmatprep.subr.bf16.mxu1 %v4731_v5 }
 0x4af   : > { %4049 = vmatmul.mubr.f32.gmra.mrb[8].mxu0 %v5691_v10  ;;  %4087 = vmatmul.mubr.f32.gmra.mrb[8].mxu1 %v5691_v10 }
 0x4b0   : > { %4121 = vmatprep.mubr.f32.mxu0 %v5665_v2  ;;  %4159 = vmatprep.mubr.f32.mxu1 %v5665_v2 }
 0x4b1   : > { %4702 = vmatpush3.bf16.msra.mxu0 %v4699_v4  ;;  %4734 = vmatpush3.bf16.msra.mxu1 %v4731_v5  ;;  %v4763_v4 = vpack.c.bf16 %v3405_v61, %v3404_v58  ;;  %v4795_v5 = vpack.c.bf16 %v3422_v63, %v3421_v62 }
 0x4b2   : > { %4704 = vmatprep.subr.bf16.mxu0 %v4703_v9  ;;  %4736 = vmatprep.subr.bf16.mxu1 %v4735_v30 }
 0x4b5   : > { %4706 = vmatpush3.bf16.msra.mxu0 %v4703_v9  ;;  %4738 = vmatpush3.bf16.msra.mxu1 %v4735_v30  ;;  %v4767_v9 = vpack.c.bf16 %v3407_v35, %v3406_v6  ;;  %v4799_v30 = vpack.c.bf16 %v3424_v7, %v3423_v33 }
 0x4b6   : > { %4708 = vmatprep.subr.bf16.mxu0 %v4707_v34  ;;  %4740 = vmatprep.subr.bf16.mxu1 %v4739_v15 }
 0x4b9   : > { %4710 = vmatpush3.bf16.msra.mxu0 %v4707_v34  ;;  %4742 = vmatpush3.bf16.msra.mxu1 %v4739_v15  ;;  %v4771_v34 = vpack.c.bf16 %v3409_v12, %v3408_v11  ;;  %v4803_v15 = vpack.c.bf16 %v3426_v14, %v3425_v13 }
 0x4ba   : > { %4712 = vmatprep.subr.bf16.mxu0 %v4711_v20  ;;  %4744 = vmatprep.subr.bf16.mxu1 %v4743_v21 }
 0x4bd   : > { %4714 = vmatpush3.bf16.msra.mxu0 %v4711_v20  ;;  %4746 = vmatpush3.bf16.msra.mxu1 %v4743_v21  ;;  %v4807_v20 = vpack.c.bf16 %v3428_v19, %v3427_v18  ;;  %v3412_v21 = vld [vmem:[%s5575_s27 + $0x350] sm:$0xff] }
 0x4be   : > { %4716 = vmatprep.subr.bf16.mxu0 %v4715_v36  ;;  %4748 = vmatprep.subr.bf16.mxu1 %v4747_v37  ;;  %v4779_v29 = vpack.c.bf16 %v3413_v25, %v3412_v21 }
 0x4c1   : > { %4718 = vmatpush3.bf16.msra.mxu0 %v4715_v36  ;;  %4750 = vmatpush3.bf16.msra.mxu1 %v4747_v37  ;;  %v4811_v36 = vpack.c.bf16 %v3430_v28, %v3429_v27  ;;  %v3414_v37 = vld [vmem:[%s5575_s27 + $0x360] sm:$0xff] }
 0x4c2   : > { %4720 = vmatprep.subr.bf16.mxu0 %v4719_v42  ;;  %4752 = vmatprep.subr.bf16.mxu1 %v4751_v43  ;;  %v4783_v41 = vpack.c.bf16 %v3415_v38, %v3414_v37 }
 0x4c5   : > { %4722 = vmatpush3.bf16.msra.mxu0 %v4719_v42  ;;  %4754 = vmatpush3.bf16.msra.mxu1 %v4751_v43  ;;  %v4815_v42 = vpack.c.bf16 %v3432_v40, %v3431_v39  ;;  %v3416_v43 = vld [vmem:[%s5575_s27 + $0x370] sm:$0xff]  ;;  %s3435_s27 = sshll.u32 %s5332_s16, 4 }
 0x4c6   : > { %4724 = vmatprep.subr.bf16.mxu0 %v4723_v48  ;;  %4756 = vmatprep.subr.bf16.mxu1 %v4755_v50  ;;  %v4787_v49 = vpack.c.bf16 %v3417_v44, %v3416_v43  ;;  %s1918_s22 = scalar_lea.vmem %s6234_s7, %s3435_s27 }
 0x4c9   : > { %4726 = vmatpush3.bf16.msra.mxu0 %v4723_v48  ;;  %4758 = vmatpush3.bf16.msra.mxu1 %v4755_v50  ;;  %v4819_v48 = vpack.c.bf16 %v3434_v47, %v3433_v45  ;;  %v5811_v50 = vpop.permute.xlu0 %1068 }
 0x4ca   : > { %4760 = vmatprep.subr.bf16.mxu0 %v4759_v46  ;;  %4792 = vmatprep.subr.bf16.mxu1 %v4791_v54 }
 0x4cc   : > { %4122 = vmatmul.mubr.f32.vlgmr.msra.gmra.mrb[10].mxu0 %v5659_v1  ;;  %4160 = vmatmul.mubr.f32.vlgmr.msra.gmra.mrb[10].mxu1 %v5659_v1 }
 0x4cd   : > { %4124 = vmatprep.mubr.f32.mxu0 %v5680_v8  ;;  %4162 = vmatprep.mubr.f32.mxu1 %v5680_v8  ;;  %v5815_v52 = vpop.permute.xlu0 %1192 }
 0x4ce   : > { %4762 = vmatpush3.bf16.msra.mxu0 %v4759_v46  ;;  %4794 = vmatpush3.bf16.msra.mxu1 %v4791_v54 }
 0x4cf   : > { %4764 = vmatprep.subr.bf16.mxu0 %v4763_v4  ;;  %4796 = vmatprep.subr.bf16.mxu1 %v4795_v5 }
 0x4d0   : > { %4125 = vmatmul.mubr.f32.gmra.mrb[12].mxu0 %v5691_v10  ;;  %4163 = vmatmul.mubr.f32.gmra.mrb[12].mxu1 %v5691_v10 }
 0x4d1   : > { %4197 = vmatprep.mubr.f32.mxu0 %v5665_v2  ;;  %4235 = vmatprep.mubr.f32.mxu1 %v5665_v2  ;;  %v4775_v2 = vpack.c.bf16 %v3411_v17, %v3410_v16  ;;  %v5833_v14 = vpop.permute.xlu0 %1426 }
 0x4d2   : > { %4766 = vmatpush3.bf16.msra.mxu0 %v4763_v4  ;;  %4798 = vmatpush3.bf16.msra.mxu1 %v4795_v5 }
 0x4d3   : > { %4768 = vmatprep.subr.bf16.mxu0 %v4767_v9  ;;  %4800 = vmatprep.subr.bf16.mxu1 %v4799_v30 }
 0x4d6   : > { %4770 = vmatpush3.bf16.msra.mxu0 %v4767_v9  ;;  %4802 = vmatpush3.bf16.msra.mxu1 %v4799_v30 }
 0x4d7   : > { %4772 = vmatprep.subr.bf16.mxu0 %v4771_v34  ;;  %4804 = vmatprep.subr.bf16.mxu1 %v4803_v15 }
 0x4da   : > { %4774 = vmatpush3.bf16.msra.mxu0 %v4771_v34  ;;  %4806 = vmatpush3.bf16.msra.mxu1 %v4803_v15 }
 0x4db   : > { %4776 = vmatprep.subr.bf16.mxu0 %v4775_v2  ;;  %4808 = vmatprep.subr.bf16.mxu1 %v4807_v20 }
 0x4de   : > { %4778 = vmatpush3.bf16.msra.mxu0 %v4775_v2  ;;  %4810 = vmatpush3.bf16.msra.mxu1 %v4807_v20 }
 0x4df   : > { %4780 = vmatprep.subr.bf16.mxu0 %v4779_v29  ;;  %4812 = vmatprep.subr.bf16.mxu1 %v4811_v36 }
 0x4e2   : > { %4782 = vmatpush3.bf16.msra.mxu0 %v4779_v29  ;;  %4814 = vmatpush3.bf16.msra.mxu1 %v4811_v36 }
 0x4e3   : > { %4784 = vmatprep.subr.bf16.mxu0 %v4783_v41  ;;  %4816 = vmatprep.subr.bf16.mxu1 %v4815_v42 }
 0x4e6   : > { %4786 = vmatpush3.bf16.msra.mxu0 %v4783_v41  ;;  %4818 = vmatpush3.bf16.msra.mxu1 %v4815_v42 }
 0x4e7   : > { %4788 = vmatprep.subr.bf16.mxu0 %v4787_v49  ;;  %4820 = vmatprep.subr.bf16.mxu1 %v4819_v48 }
 0x4ea   : > { %4790 = vmatpush3.bf16.msra.mxu0 %v4787_v49  ;;  %4822 = vmatpush3.bf16.msra.mxu1 %v4819_v48 }
 0x4ed   : > { %4198 = vmatmul.mubr.f32.vlgmr.msra.gmra.mrb[14].mxu0 %v5659_v1  ;;  %4236 = vmatmul.mubr.f32.vlgmr.msra.gmra.mrb[14].mxu1 %v5659_v1  ;;  %v5817_v1 = vpop.permute.xlu1 %1188 }
 0x4ee   : > { %4200 = vmatprep.mubr.f32.mxu0 %v5680_v8  ;;  %4238 = vmatprep.mubr.f32.mxu1 %v5680_v8 }
 0x4f1   : > { %4201 = vmatmul.mubr.f32.gmra.mrb[16].mxu0 %v5691_v10  ;;  %4239 = vmatmul.mubr.f32.gmra.mrb[16].mxu1 %v5691_v10  ;;  %v5827_v11 = vpop.permute.xlu1 %1307 }
 0x4f2   : > { %4245 = vmatprep.mubr.msk.f32.mxu0 %vm779_vm3, %v5529_v22  ;;  %4252 = vmatprep.mubr.msk.f32.mxu1 %vm779_vm3, %v5533_v23 }
 0x4f5   : > { %v5829_v12 = vpop.permute.xlu1 %1311 }
 0x4f9   : > { %v5831_v13 = vpop.permute.xlu1 %1430 }
 0x4fd   : > { %v5843_v49 = vpop.permute.xlu1 %1545 }
 0x501   : > { %v5845_v48 = vpop.permute.xlu1 %1664 }
 0x55e   : > { %v3971_v53 = vpop.f32.mrb[2].mxu0  ;;  %v4009_v8 = vpop.f32.mrb[2].mxu1 }
 0x55f   : > { %v1077_v55 = vmul.f32 %v3971_v53, %v5813_v51  ;;  %v1196_v10 = vmul.f32 %v4009_v8, %v5815_v52  ;;  %v1047_v46 = vpop.f32.mrb[3].mxu0  ;;  %v1168_v54 = vpop.f32.mrb[3].mxu1 }
 0x560   : > { %v1076_v22 = vmul.f32 %v5811_v50, %v1047_v46  ;;  %v1195_v23 = vmul.f32 %v5817_v1, %v1168_v54  ;;  %v5847_v53 = vpop.permute.xlu0 %1549  ;;  %v5849_v8 = vpop.permute.xlu1 %1668 }
 0x561   : > { %v1200_v58 = vadd.f32 %v1196_v10, %v1077_v55 }
 0x562   : > { %v1199_v61 = vadd.f32 %v1195_v23, %v1076_v22  ;;  %v3974_v62 = vpop.f32.mrb[4].mxu0  ;;  %v4012_v63 = vpop.f32.mrb[4].mxu1 }
 0x563   : > { %v1079_v4 = vmul.f32 %v3974_v62, %v5813_v51  ;;  %v1198_v5 = vmul.f32 %v4012_v63, %v5815_v52  ;;  %v1057_v6 = vpop.f32.mrb[5].mxu0  ;;  %v1178_v35 = vpop.f32.mrb[5].mxu1 }
 0x564   : > { %v1078_v33 = vmul.f32 %v5811_v50, %v1057_v6  ;;  %v1197_v7 = vmul.f32 %v5817_v1, %v1178_v35 }
 0x565   : > { %v1202_v9 = vadd.f32 %v1198_v5, %v1079_v4 }
 0x566   : > { %v1201_v30 = vadd.f32 %v1197_v7, %v1078_v33 }
 0x57e   : > { %v4047_v34 = vpop.f32.mrb[6].mxu0  ;;  %v4085_v15 = vpop.f32.mrb[6].mxu1 }
 0x57f   : > { %v1315_v16 = vmul.f32 %v4047_v34, %v5829_v12  ;;  %v1287_v17 = vpop.f32.mrb[7].mxu0  ;;  %v1406_v18 = vpop.f32.mrb[7].mxu1  ;;  %v1434_v20 = vmul.f32 %v4085_v15, %v5831_v13 }
 0x580   : > { %v1314_v19 = vmul.f32 %v5827_v11, %v1287_v17  ;;  %v1433_v25 = vmul.f32 %v5833_v14, %v1406_v18 }
 0x581   : > { %v1319_v2 = vadd.f32 %v1315_v16, %v1200_v58 }
 0x582   : > { %v1318_v21 = vadd.f32 %v1314_v19, %v1199_v61  ;;  %v4050_v27 = vpop.f32.mrb[8].mxu0  ;;  %v4088_v28 = vpop.f32.mrb[8].mxu1 }
 0x583   : > { %v1438_v29 = vadd.f32 %v1434_v20, %v1319_v2  ;;  %v1317_v36 = vmul.f32 %v4050_v27, %v5829_v12  ;;  %v1297_v37 = vpop.f32.mrb[9].mxu0  ;;  %v1416_v38 = vpop.f32.mrb[9].mxu1  ;;  %v1436_v42 = vmul.f32 %v4088_v28, %v5831_v13 }
 0x584   : > { %v1437_v39 = vadd.f32 %v1433_v25, %v1318_v21  ;;  %v1316_v40 = vmul.f32 %v5827_v11, %v1297_v37  ;;  %v1435_v44 = vmul.f32 %v5833_v14, %v1416_v38  ;;  %v5859_v2 = vpop.permute.xlu0 %1783  ;;  %v5861_v20 = vpop.permute.xlu1 %1787 }
 0x585   : > { %v1321_v41 = vadd.f32 %v1317_v36, %v1202_v9 }
 0x586   : > { %v1320_v43 = vadd.f32 %v1316_v40, %v1201_v30 }
 0x587   : > { %v1440_v45 = vadd.f32 %v1436_v42, %v1321_v41  ;;  %v1920_v41 = vld [vmem:[%s1918_s22 + $0x8] sm:$0xff] }
 0x588   : > { %v1439_v47 = vadd.f32 %v1435_v44, %v1320_v43  ;;  %v5864_v21 = vpop.permute.xlu0 %1906  ;;  %v5866_v25 = vpop.permute.xlu1 %1902 }
 0x59f   : > { %v4123_v55 = vpop.f32.mrb[10].mxu0  ;;  %v4161_v10 = vpop.f32.mrb[10].mxu1 }
 0x5a0   : > { %v1553_v46 = vmul.f32 %v4123_v55, %v5847_v53  ;;  %v1525_v54 = vpop.f32.mrb[11].mxu0  ;;  %v1644_v22 = vpop.f32.mrb[11].mxu1  ;;  %v1672_v61 = vmul.f32 %v4161_v10, %v5849_v8  ;;  %v1919_v55 = vld [vmem:[%s1918_s22] sm:$0xff]  ;;  %s3028_s22 = scalar_lea.vmem %s6236_s9, %s3435_s27  ;;  %s3091_s27 = sadd.s32 1, %s5332_s16 }
 0x5a1   : > { %v1552_v23 = vmul.f32 %v5843_v49, %v1525_v54  ;;  %v1671_v63 = vmul.f32 %v5845_v48, %v1644_v22  ;;  %p3563_p13 = scmp.ge.s32.totalorder %s3091_s27, 2 }
 0x5a2   : > { %v1557_v58 = vadd.f32 %v1553_v46, %v1438_v29 }
 0x5a3   : > { %v1556_v62 = vadd.f32 %v1552_v23, %v1437_v39  ;;  %v4126_v4 = vpop.f32.mrb[12].mxu0  ;;  %v4164_v5 = vpop.f32.mrb[12].mxu1 }
 0x5a4   : > { %v1676_v6 = vadd.f32 %v1672_v61, %v1557_v58  ;;  %v1555_v35 = vmul.f32 %v4126_v4, %v5847_v53  ;;  %v1535_v33 = vpop.f32.mrb[13].mxu0  ;;  %v1654_v7 = vpop.f32.mrb[13].mxu1  ;;  %v1674_v15 = vmul.f32 %v4164_v5, %v5849_v8 }
 0x5a5   : > { %v1675_v9 = vadd.f32 %v1671_v63, %v1556_v62  ;;  %v1554_v30 = vmul.f32 %v5843_v49, %v1535_v33  ;;  %v1673_v17 = vmul.f32 %v5845_v48, %v1654_v7 }
 0x5a6   : > { %v1559_v34 = vadd.f32 %v1555_v35, %v1440_v45 }
 0x5a7   : > { %v1558_v16 = vadd.f32 %v1554_v30, %v1439_v47 }
 0x5a8   : > { %v1678_v18 = vadd.f32 %v1674_v15, %v1559_v34 }
 0x5a9   : > { %v1677_v19 = vadd.f32 %v1673_v17, %v1558_v16 }
 0x5c0   : > { %v4199_v27 = vpop.f32.mrb[14].mxu0  ;;  %v4237_v28 = vpop.f32.mrb[14].mxu1 }
 0x5c1   : > { %v1791_v29 = vmul.f32 %v4199_v27, %v5861_v20  ;;  %v1763_v36 = vpop.f32.mrb[15].mxu0  ;;  %v1882_v37 = vpop.f32.mrb[15].mxu1  ;;  %v1910_v40 = vmul.f32 %v4237_v28, %v5864_v21 }
 0x5c2   : > { %v1790_v38 = vmul.f32 %v5859_v2, %v1763_v36  ;;  %v1909_v43 = vmul.f32 %v5866_v25, %v1882_v37 }
 0x5c3   : > { %v1795_v39 = vadd.f32 %v1791_v29, %v1676_v6 }
 0x5c4   : > { %v1794_v42 = vadd.f32 %v1790_v38, %v1675_v9  ;;  %v4202_v44 = vpop.f32.mrb[16].mxu0  ;;  %v4240_v45 = vpop.f32.mrb[16].mxu1 }
 0x5c5   : > { %v1914_v47 = vadd.f32 %v1910_v40, %v1795_v39  ;;  %v1793_v10 = vmul.f32 %v4202_v44, %v5861_v20  ;;  %v1773_v46 = vpop.f32.mrb[17].mxu0  ;;  %v1892_v54 = vpop.f32.mrb[17].mxu1  ;;  %v1912_v62 = vmul.f32 %v4240_v45, %v5864_v21  ;;  %v5252_v39 = vld [vmem:[%s5475_s19 + $0x8] sm:$0xff] }
 0x5c6   : > { %v1913_v22 = vadd.f32 %v1909_v43, %v1794_v42  ;;  %v1792_v23 = vmul.f32 %v5859_v2, %v1773_v46  ;;  %v1911_v5 = vmul.f32 %v5866_v25, %v1892_v54  ;;  %v5255_v46 = vld [vmem:[%s5475_s19 + $0x10] sm:$0xff] }
 0x5c7   : > { %v1922_v58 = vadd.f32 %v1920_v41, %v1914_v47  ;;  %v1797_v61 = vadd.f32 %v1793_v10, %v1678_v18 }
 0x5c8   : > { %v1921_v63 = vadd.f32 %v1919_v55, %v1913_v22  ;;  %v1796_v4 = vadd.f32 %v1792_v23, %v1677_v19 }
 0x5c9   : > { %v3437_v6 = vmul.f32 -1.442695, %v1922_v58  ;;  %v1916_v35 = vadd.f32 %v1912_v62, %v1797_v61  ;;  %v5256_v58 = vld [vmem:[#allocation2 + $0x8] sm:$0xff]  ;;  %v5257_v61 = vld [vmem:[#allocation2 + $0x18] sm:$0xff] }
 0x5ca   : > { %v3436_v33 = vmul.f32 -1.442695, %v1921_v63  ;;  %v1915_v7 = vadd.f32 %v1911_v5, %v1796_v4 }
 0x5cb   : > { %5228 = vpow2.f32 %v3437_v6  ;;  %v1924_v9 = vadd.f32 %v1920_v41, %v1916_v35  ;;  %v5253_v41 = vld [vmem:[%s5475_s19] sm:$0xff] }
 0x5cc   : > { %5230 = vpow2.f32 %v3436_v33  ;;  %v1923_v30 = vadd.f32 %v1919_v55, %v1915_v7  ;;  %v5254_v55 = vld [vmem:[%s5475_s19 + $0x18] sm:$0xff]  ;;  %s5906_s19 = scalar_lea.vmem %s6235_s8, %s3315_s29  ;;  %s5353_s29 = smov 96  }
 0x5cd   : > { %v3439_v34 = vmul.f32 -1.442695, %v1924_v9  ;;  %v2149_v62 = vld [vmem:[%s5906_s19] sm:$0xff]  ;;  %v2150_v63 = vld [vmem:[%s5906_s19 + $0x8] sm:$0xff]  ;;  %v2151_v35 = vld [vmem:[%s5906_s19 + $0x10] sm:$0xff] }
 0x5ce   : > { %v3438_v15 = vmul.f32 -1.442695, %v1923_v30  ;;  %v3445_v4 = vld [vmem:[%s5906_s19 + $0x80] sm:$0xff]  ;;  %v4831_v5 = vpack.c.bf16 %v2150_v63, %v2149_v62  ;;  %v3446_v6 = vld [vmem:[%s5906_s19 + $0x88] sm:$0xff]  ;;  %v2152_v33 = vld [vmem:[%s5906_s19 + $0x18] sm:$0xff] }
 0x5cf   : > { %5232 = vpow2.f32 %v3439_v34  ;;  %v4863_v7 = vpack.c.bf16 %v3446_v6, %v3445_v4  ;;  %v4835_v9 = vpack.c.bf16 %v2152_v33, %v2151_v35  ;;  %v3447_v30 = vld [vmem:[%s5906_s19 + $0x90] sm:$0xff]  ;;  %v3448_v34 = vld [vmem:[%s5906_s19 + $0x98] sm:$0xff]  ;;  %v2161_v4 = vld [vmem:[%s5906_s19 + $0x60] sm:$0xff] }
 0x5d0   : > { %5234 = vpow2.f32 %v3438_v15  ;;  %v2153_v15 = vld [vmem:[%s5906_s19 + $0x20] sm:$0xff]  ;;  %v3458_v35 = vld [vmem:[%s5906_s19 + $0xe8] sm:$0xff]  ;;  %v3469_v56 = vld [vmem:[%s5906_s19 + $0x138] sm:$0xff] }
 0x5d1   : > { %v3457_v6 = vld [vmem:[%s5906_s19 + $0xe0] sm:$0xff] }
 0x5d5   : > { %v5229_v16 = vpop.eup %5228 }
 0x5d6   : > { %v5231_v17 = vpop.eup %5230  ;;  %v1938_v18 = vadd.f32 1.0, %v5229_v16  ;;  %v4867_v16 = vpack.c.bf16 %v3448_v34, %v3447_v30  ;;  %v2164_v30 = vld [vmem:[%s5906_s19 + $0x78] sm:$0xff] }
 0x5d7   : > { %v1937_v19 = vadd.f32 1.0, %v5231_v17  ;;  %v2154_v17 = vld [vmem:[%s5906_s19 + $0x28] sm:$0xff] }
 0x5d8   : > { %5236 = vrcp.f32 %v1938_v18  ;;  %v3449_v18 = vld [vmem:[%s5906_s19 + $0xa0] sm:$0xff] }
 0x5d9   : > { %v5233_v27 = vpop.eup %5232  ;;  %5238 = vrcp.f32 %v1937_v19  ;;  %v3450_v19 = vld [vmem:[%s5906_s19 + $0xa8] sm:$0xff] }
 0x5da   : > { %v5235_v28 = vpop.eup %5234  ;;  %v1940_v29 = vadd.f32 1.0, %v5233_v27  ;;  %v4839_v27 = vpack.c.bf16 %v2154_v17, %v2153_v15  ;;  %v3459_v15 = vld [vmem:[%s5906_s19 + $0xf0] sm:$0xff] }
 0x5db   : > { %v1939_v36 = vadd.f32 1.0, %v5235_v28  ;;  %v4871_v28 = vpack.c.bf16 %v3450_v19, %v3449_v18  ;;  %v3462_v18 = vld [vmem:[%s5906_s19 + $0x100] sm:$0xff]  ;;  %v3463_v19 = vld [vmem:[%s5906_s19 + $0x108] sm:$0xff] }
 0x5dc   : > { %5240 = vrcp.f32 %v1940_v29  ;;  %v2155_v29 = vld [vmem:[%s5906_s19 + $0x30] sm:$0xff] }
 0x5dd   : > { %5242 = vrcp.f32 %v1939_v36  ;;  %v2156_v36 = vld [vmem:[%s5906_s19 + $0x38] sm:$0xff] }
 0x5e2   : > { %v5881_v37 = vpop.eup %5236 }
 0x5e3   : > { %v5883_v38 = vpop.eup %5238  ;;  %v1950_v40 = vmul.f32 %v5252_v39, %v5881_v37  ;;  %v3451_v39 = vld [vmem:[%s5906_s19 + $0xb0] sm:$0xff] }
 0x5e4   : > { %v1949_v42 = vmul.f32 %v5253_v41, %v5883_v38  ;;  %v4843_v41 = vpack.c.bf16 %v2156_v36, %v2155_v29  ;;  %v3480_v29 = vld [vmem:[%s5906_s19 + $0x188] sm:$0xff] }
 0x5e6   : > { %v5889_v43 = vpop.eup %5240  ;;  %v5208_v44 = vpack.i.bf16 %v1950_v40, %v1949_v42  ;;  %v4823_v45 = vpack.c.bf16 %v1950_v40, %v1949_v42  ;;  %v3452_v40 = vld [vmem:[%s5906_s19 + $0xb8] sm:$0xff] }
 0x5e7   : > { %v5891_v47 = vpop.eup %5242  ;;  %v1952_v10 = vmul.f32 %v5254_v55, %v5889_v43  ;;  %v4875_v42 = vpack.c.bf16 %v3452_v40, %v3451_v39  ;;  %v3453_v55 = vld [vmem:[%s5906_s19 + $0xc0] sm:$0xff] }
 0x5e8   : > { %5209 = vrot.lane.b32.xlu1 %v5208_v44, %s5343_s24  ;;  %4824 = vmatprep.subr.bf16.mxu0 %v4823_v45  ;;  %v1951_v54 = vmul.f32 %v5255_v46, %v5891_v47  ;;  %v2157_v44 = vld [vmem:[%s5906_s19 + $0x40] sm:$0xff] }
 0x5e9   : > { %4826 = vmatpush3.bf16.msra.mxu0 %v4823_v45  ;;  %v2158_v45 = vld [vmem:[%s5906_s19 + $0x48] sm:$0xff] }
 0x5ea   : > { %v5218_v22 = vpack.i.bf16 %v1952_v10, %v1951_v54  ;;  %v4827_v23 = vpack.c.bf16 %v1952_v10, %v1951_v54  ;;  %4832 = vmatprep.subr.bf16.mxu0 %v4831_v5  ;;  %v3454_v10 = vld [vmem:[%s5906_s19 + $0xc8] sm:$0xff]  ;;  %v4847_v46 = vpack.c.bf16 %v2158_v45, %v2157_v44 }
 0x5eb   : > { %v4879_v54 = vpack.c.bf16 %v3454_v10, %v3453_v55 }
 0x5ec   : > { %4246 = vmatmul.mubr.msk.f32.vlgmr.msra.gmra.mrb[18].mxu0 %vm779_vm3, %v5256_v58  ;;  %5219 = vrot.lane.b32.xlu0 %v5218_v22, %s5343_s24  ;;  %v2159_v22 = vld [vmem:[%s5906_s19 + $0x50] sm:$0xff] }
 0x5ed   : > { %4828 = vmatprep.subr.bf16.mxu1 %v4827_v23  ;;  %4834 = vmatpush3.bf16.msra.mxu0 %v4831_v5  ;;  %v3455_v58 = vld [vmem:[%s5906_s19 + $0xd0] sm:$0xff]  ;;  %v2162_v5 = vld [vmem:[%s5906_s19 + $0x68] sm:$0xff] }
 0x5ee   : > { %4830 = vmatpush3.bf16.msra.mxu1 %v4827_v23  ;;  %4836 = vmatprep.subr.bf16.mxu0 %v4835_v9  ;;  %v2160_v23 = vld [vmem:[%s5906_s19 + $0x58] sm:$0xff]  ;;  %v4855_v33 = vpack.c.bf16 %v2162_v5, %v2161_v4 }
 0x5ef   : > { %4864 = vmatprep.subr.bf16.mxu1 %v4863_v7  ;;  %v4851_v62 = vpack.c.bf16 %v2160_v23, %v2159_v22  ;;  %v5258_v22 = vld [vmem:[#allocation3 + $0x8] sm:$0xff] }
 0x5f1   : > { %4253 = vmatmul.mubr.msk.f32.vlgmr.msra.gmra.mrb[18].mxu1 %vm779_vm3, %v5257_v61  ;;  %4838 = vmatpush3.bf16.msra.mxu0 %v4835_v9  ;;  %v3456_v61 = vld [vmem:[%s5906_s19 + $0xd8] sm:$0xff]  ;;  %v2163_v9 = vld [vmem:[%s5906_s19 + $0x70] sm:$0xff] }
 0x5f2   : > { %4866 = vmatpush3.bf16.msra.mxu1 %v4863_v7  ;;  %4840 = vmatprep.subr.bf16.mxu0 %v4839_v27  ;;  %v4883_v63 = vpack.c.bf16 %v3456_v61, %v3455_v58  ;;  %v4887_v7 = vpack.c.bf16 %v3458_v35, %v3457_v6  ;;  %v4859_v34 = vpack.c.bf16 %v2164_v30, %v2163_v9  ;;  %v5259_v58 = vld [vmem:[#allocation3] sm:$0xff]  ;;  %v3465_v6 = vld [vmem:[%s5906_s19 + $0x118] sm:$0xff]  ;;  %v3481_v35 = vld [vmem:[%s5906_s19 + $0x190] sm:$0xff] }
 0x5f3   : > { %4868 = vmatprep.subr.bf16.mxu1 %v4867_v16 }
 0x5f5   : > { %4842 = vmatpush3.bf16.msra.mxu0 %v4839_v27  ;;  %v3479_v27 = vld [vmem:[%s5906_s19 + $0x180] sm:$0xff] }
 0x5f6   : > { %4870 = vmatpush3.bf16.msra.mxu1 %v4867_v16  ;;  %4844 = vmatprep.subr.bf16.mxu0 %v4843_v41  ;;  %v3460_v16 = vld [vmem:[%s5906_s19 + $0xf8] sm:$0xff]  ;;  %v4927_v36 = vpack.c.bf16 %v3480_v29, %v3479_v27  ;;  %v5261_v29 = vld [vmem:[#allocation3 + $0x10] sm:$0xff] }
 0x5f7   : > { %4872 = vmatprep.subr.bf16.mxu1 %v4871_v28  ;;  %v4891_v17 = vpack.c.bf16 %v3460_v16, %v3459_v15 }
 0x5f9   : > { %4846 = vmatpush3.bf16.msra.mxu0 %v4843_v41 }
 0x5fa   : > { %4874 = vmatpush3.bf16.msra.mxu1 %v4871_v28  ;;  %4848 = vmatprep.subr.bf16.mxu0 %v4847_v46  ;;  %v4895_v28 = vpack.c.bf16 %v3463_v19, %v3462_v18  ;;  %v5260_v19 = vld [vmem:[#allocation3 + $0x18] sm:$0xff] }
 0x5fb   : > { %4876 = vmatprep.subr.bf16.mxu1 %v4875_v42 }
 0x5fd   : > { %4850 = vmatpush3.bf16.msra.mxu0 %v4847_v46 }
 0x5fe   : > { %4878 = vmatpush3.bf16.msra.mxu1 %v4875_v42  ;;  %4852 = vmatprep.subr.bf16.mxu0 %v4851_v62 }
 0x5ff   : > { %4880 = vmatprep.subr.bf16.mxu1 %v4879_v54 }
 0x601   : > { %4854 = vmatpush3.bf16.msra.mxu0 %v4851_v62  ;;  %v3464_v62 = vld [vmem:[%s5906_s19 + $0x110] sm:$0xff] }
 0x602   : > { %4882 = vmatpush3.bf16.msra.mxu1 %v4879_v54  ;;  %4856 = vmatprep.subr.bf16.mxu0 %v4855_v33 }
 0x603   : > { %4884 = vmatprep.subr.bf16.mxu1 %v4883_v63 }
 0x605   : > { %4858 = vmatpush3.bf16.msra.mxu0 %v4855_v33  ;;  %v3482_v33 = vld [vmem:[%s5906_s19 + $0x198] sm:$0xff] }
 0x606   : > { %4886 = vmatpush3.bf16.msra.mxu1 %v4883_v63  ;;  %4860 = vmatprep.subr.bf16.mxu0 %v4859_v34  ;;  %v4931_v18 = vpack.c.bf16 %v3482_v33, %v3481_v35  ;;  %v3473_v35 = vld [vmem:[%s5906_s19 + $0x158] sm:$0xff]  ;;  %v3489_v33 = vld [vmem:[%s5906_s19 + $0x1d0] sm:$0xff] }
 0x607   : > { %4888 = vmatprep.subr.bf16.mxu1 %v4887_v7 }
 0x609   : > { %4862 = vmatpush3.bf16.msra.mxu0 %v4859_v34 }
 0x60a   : > { %4890 = vmatpush3.bf16.msra.mxu1 %v4887_v7  ;;  %4896 = vmatprep.subr.bf16.mxu0 %v4895_v28 }
 0x60b   : > { %4892 = vmatprep.subr.bf16.mxu1 %v4891_v17 }
 0x60e   : > { %4894 = vmatpush3.bf16.msra.mxu1 %v4891_v17  ;;  %v4899_v17 = vpack.c.bf16 %v3465_v6, %v3464_v62  ;;  %v3487_v62 = vld [vmem:[%s5906_s19 + $0x1c0] sm:$0xff]  ;;  %v3472_v6 = vld [vmem:[%s5906_s19 + $0x150] sm:$0xff] }
 0x60f   : > { %4928 = vmatprep.subr.bf16.mxu1 %v4927_v36 }
 0x65a   : > { %v5210_v55 = vpop.permute.xlu1 %5209 }
 0x65b   : > { %v5212_v10 = vunpack.i.h.bf16 %v5210_v55  ;;  %v5211_v46 = vunpack.i.l.bf16 %v5210_v55 }
 0x65d   : > { %v2136_v23 = vsel %vm774_vm4, %v5258_v22, %v5212_v10  ;;  %v2135_v61 = vsel %vm774_vm4, %v5259_v58, %v5211_v46  ;;  %v3470_v58 = vld [vmem:[%s5906_s19 + $0x140] sm:$0xff] }
 0x65e   : > { %v5220_v54 = vpop.permute.xlu0 %5219  ;;  %v2139_v30 = vsel %vm958_vm5, %v2135_v61, %v5187_v60  ;;  %v2140_v34 = vsel %vm958_vm5, %v2136_v23, %v5188_v59  ;;  %v3466_v59 = vld [vmem:[%s5906_s19 + $0x120] sm:$0xff]  ;;  %v3471_v61 = vld [vmem:[%s5906_s19 + $0x148] sm:$0xff] }
 0x65f   : > { %v5222_v63 = vunpack.i.h.bf16 %v5220_v54  ;;  %v5221_v4 = vunpack.i.l.bf16 %v5220_v54  ;;  %v3486_v54 = vld [vmem:[%s5906_s19 + $0x1b8] sm:$0xff] }
 0x661   : > { %v2138_v27 = vsel %vm774_vm4, %v5260_v19, %v5222_v63  ;;  %v2137_v60 = vsel %vm774_vm4, %v5261_v29, %v5221_v4  ;;  %v3488_v63 = vld [vmem:[%s5906_s19 + $0x1c8] sm:$0xff]  ;;  %v4911_v4 = vpack.c.bf16 %v3471_v61, %v3470_v58  ;;  %v3500_v58 = vld [vmem:[%s5906_s19 + $0x220] sm:$0xff] }
 0x662   : > { %v2142_v55 = vsel %vm958_vm5, %v2138_v27, %v5193_v3  ;;  %v3485_v3 = vld [vmem:[%s5906_s19 + $0x1b0] sm:$0xff]  ;;  %v3492_v19 = vld [vmem:[%s5906_s19 + $0x1e8] sm:$0xff] }
 0x663   : > { %v4939_v23 = vpack.c.bf16 %v3486_v54, %v3485_v3  ;;  %v3515_v3 = vld [vmem:[%s5906_s19 + $0x290] sm:$0xff]  ;;  %v3516_v54 = vld [vmem:[%s5906_s19 + $0x298] sm:$0xff]  ;;  %v3501_v61 = vld [vmem:[%s5906_s19 + $0x228] sm:$0xff] }
 0x6bf   : > { %v4247_v39 = vpop.f32.mrb[18].mxu0 }
 0x6c0   : > { %v2019_v40 = vpop.f32.mrb[19].mxu0 }
 0x6c1   : > { %v5213_v41 = vpack.i.bf16 %v4247_v39, %v2019_v40 }
 0x6c3   : > { %5214 = vrot.lane.b32.xlu1 %v5213_v41, %s5353_s29  ;;  %v3467_v41 = vld [vmem:[%s5906_s19 + $0x128] sm:$0xff] }
 0x6c4   : > { %v4254_v42 = vpop.f32.mrb[18].mxu1  ;;  %v4903_v46 = vpack.c.bf16 %v3467_v41, %v3466_v59  ;;  %v3493_v59 = vld [vmem:[%s5906_s19 + $0x1f0] sm:$0xff] }
 0x6c5   : > { %v2094_v44 = vpop.f32.mrb[19].mxu1 }
 0x6c6   : > { %v5223_v45 = vpack.i.bf16 %v4254_v42, %v2094_v44  ;;  %v3483_v42 = vld [vmem:[%s5906_s19 + $0x1a0] sm:$0xff]  ;;  %v3484_v44 = vld [vmem:[%s5906_s19 + $0x1a8] sm:$0xff] }
 0x6c8   : > { %5224 = vrot.lane.b32.xlu1 %v5223_v45, %s5353_s29  ;;  %v2141_v45 = vsel %vm958_vm5, %v2137_v60, %v5192_v0  ;;  %v4935_v0 = vpack.c.bf16 %v3484_v44, %v3483_v42  ;;  %v3476_v60 = vld [vmem:[%s5906_s19 + $0x170] sm:$0xff]  ;;  %v3496_v42 = vld [vmem:[%s5906_s19 + $0x200] sm:$0xff]  ;;  %v3497_v44 = vld [vmem:[%s5906_s19 + $0x208] sm:$0xff] }
 0x735   : > { %v5215_v5 = vpop.permute.xlu1 %5214 }
 0x736   : > { %v5217_v7 = vunpack.i.h.bf16 %v5215_v5  ;;  %v5216_v9 = vunpack.i.l.bf16 %v5215_v5  ;;  %v4943_v5 = vpack.c.bf16 %v3488_v63, %v3487_v62  ;;  %v3517_v62 = vld [vmem:[%s5906_s19 + $0x2a0] sm:$0xff]  ;;  %v3518_v63 = vld [vmem:[%s5906_s19 + $0x2a8] sm:$0xff] }
 0x738   : > { %v5959_v15 = vsel %vm2143_vm6, %v2140_v34, %v5217_v7  ;;  %v5962_v16 = vsel %vm2143_vm6, %v2139_v30, %v5216_v9  ;;  %v3490_v7 = vld [vmem:[%s5906_s19 + $0x1d8] sm:$0xff]  ;;  %v4915_v9 = vpack.c.bf16 %v3473_v35, %v3472_v6  ;;  %v3474_v34 = vld [vmem:[%s5906_s19 + $0x160] sm:$0xff]  ;;  %v3502_v6 = vld [vmem:[%s5906_s19 + $0x230] sm:$0xff] }
 0x739   : > { %4287 = vmatprep.mubr.f32.mxu0 %v5962_v16  ;;  %4325 = vmatprep.mubr.f32.mxu1 %v5962_v16  ;;  %v4947_v30 = vpack.c.bf16 %v3490_v7, %v3489_v33  ;;  %v3503_v35 = vld [vmem:[%s5906_s19 + $0x238] sm:$0xff]  ;;  %v3519_v33 = vld [vmem:[%s5906_s19 + $0x2b0] sm:$0xff] }
 0x73a   : > { %v5225_v57 = vpop.permute.xlu1 %5224  ;;  %4288 = vmatmul.mubr.f32.vlgmr.msra.gmra.mrb[20].mxu0 %v5959_v15  ;;  %4326 = vmatmul.mubr.f32.vlgmr.msra.gmra.mrb[20].mxu1 %v5959_v15  ;;  %v3520_v7 = vld [vmem:[%s5906_s19 + $0x2b8] sm:$0xff] }
 0x73b   : > { %v5227_v39 = vunpack.i.h.bf16 %v5225_v57  ;;  %v5226_v40 = vunpack.i.l.bf16 %v5225_v57  ;;  %4898 = vmatpush3.bf16.msra.mxu0 %v4895_v28  ;;  %4930 = vmatpush3.bf16.msra.mxu1 %v4927_v36  ;;  %v3468_v36 = vld [vmem:[%s5906_s19 + $0x130] sm:$0xff]  ;;  %v3477_v57 = vld [vmem:[%s5906_s19 + $0x178] sm:$0xff] }
 0x73c   : > { %4900 = vmatprep.subr.bf16.mxu0 %v4899_v17  ;;  %4932 = vmatprep.subr.bf16.mxu1 %v4931_v18  ;;  %v4907_v22 = vpack.c.bf16 %v3469_v56, %v3468_v36  ;;  %v4959_v36 = vpack.c.bf16 %v3497_v44, %v3496_v42  ;;  %v3499_v56 = vld [vmem:[%s5906_s19 + $0x218] sm:$0xff]  ;;  %v3508_v42 = vld [vmem:[%s5906_s19 + $0x260] sm:$0xff]  ;;  %v3509_v44 = vld [vmem:[%s5906_s19 + $0x268] sm:$0xff] }
 0x73d   : > { %v5981_v10 = vsel %vm2143_vm6, %v2142_v55, %v5227_v39  ;;  %v5984_v28 = vsel %vm2143_vm6, %v2141_v45, %v5226_v40  ;;  %v3494_v39 = vld [vmem:[%s5906_s19 + $0x1f8] sm:$0xff]  ;;  %v4923_v40 = vpack.c.bf16 %v3477_v57, %v3476_v60  ;;  %v3513_v45 = vld [vmem:[%s5906_s19 + $0x280] sm:$0xff]  ;;  %v3514_v55 = vld [vmem:[%s5906_s19 + $0x288] sm:$0xff] }
 0x73e   : > { %4290 = vmatprep.mubr.f32.mxu0 %v5984_v28  ;;  %4328 = vmatprep.mubr.f32.mxu1 %v5984_v28  ;;  %v4955_v41 = vpack.c.bf16 %v3494_v39, %v3493_v59  ;;  %v3506_v60 = vld [vmem:[%s5906_s19 + $0x250] sm:$0xff]  ;;  %v3507_v57 = vld [vmem:[%s5906_s19 + $0x258] sm:$0xff] }
 0x73f   : > { %4291 = vmatmul.mubr.f32.gmra.mrb[22].mxu0 %v5981_v10  ;;  %4329 = vmatmul.mubr.f32.gmra.mrb[22].mxu1 %v5981_v10  ;;  %v3523_v59 = vld [vmem:[%s5906_s19 + $0x2d0] sm:$0xff]  ;;  %v3524_v39 = vld [vmem:[%s5906_s19 + $0x2d8] sm:$0xff] }
 0x740   : > { %4902 = vmatpush3.bf16.msra.mxu0 %v4899_v17  ;;  %4934 = vmatpush3.bf16.msra.mxu1 %v4931_v18  ;;  %v3475_v17 = vld [vmem:[%s5906_s19 + $0x168] sm:$0xff]  ;;  %v3491_v18 = vld [vmem:[%s5906_s19 + $0x1e0] sm:$0xff] }
 0x741   : > { %4363 = vmatprep.mubr.f32.mxu0 %v5962_v16  ;;  %4401 = vmatprep.mubr.f32.mxu1 %v5962_v16  ;;  %v4919_v27 = vpack.c.bf16 %v3475_v17, %v3474_v34  ;;  %v4951_v29 = vpack.c.bf16 %v3492_v19, %v3491_v18  ;;  %v3504_v34 = vld [vmem:[%s5906_s19 + $0x240] sm:$0xff]  ;;  %v3505_v17 = vld [vmem:[%s5906_s19 + $0x248] sm:$0xff] }
 0x742   : > { %4904 = vmatprep.subr.bf16.mxu0 %v4903_v46  ;;  %4936 = vmatprep.subr.bf16.mxu1 %v4935_v0  ;;  %v3521_v18 = vld [vmem:[%s5906_s19 + $0x2c0] sm:$0xff]  ;;  %v3522_v19 = vld [vmem:[%s5906_s19 + $0x2c8] sm:$0xff] }
 0x744   : > { %4906 = vmatpush3.bf16.msra.mxu0 %v4903_v46  ;;  %4938 = vmatpush3.bf16.msra.mxu1 %v4935_v0  ;;  %v4991_v46 = vpack.c.bf16 %v3514_v55, %v3513_v45  ;;  %v3498_v0 = vld [vmem:[%s5906_s19 + $0x210] sm:$0xff]  ;;  %v3525_v45 = vld [vmem:[%s5906_s19 + $0x2e0] sm:$0xff]  ;;  %v3526_v55 = vld [vmem:[%s5906_s19 + $0x2e8] sm:$0xff] }
 0x745   : > { %4908 = vmatprep.subr.bf16.mxu0 %v4907_v22  ;;  %4940 = vmatprep.subr.bf16.mxu1 %v4939_v23 }
 0x748   : > { %4910 = vmatpush3.bf16.msra.mxu0 %v4907_v22  ;;  %4942 = vmatpush3.bf16.msra.mxu1 %v4939_v23  ;;  %v4963_v22 = vpack.c.bf16 %v3499_v56, %v3498_v0  ;;  %v4995_v23 = vpack.c.bf16 %v3516_v54, %v3515_v3  ;;  %v3510_v0 = vld [vmem:[%s5906_s19 + $0x270] sm:$0xff]  ;;  %v3511_v56 = vld [vmem:[%s5906_s19 + $0x278] sm:$0xff] }
 0x749   : > { %4912 = vmatprep.subr.bf16.mxu0 %v4911_v4  ;;  %4944 = vmatprep.subr.bf16.mxu1 %v4943_v5  ;;  %v3527_v3 = vld [vmem:[%s5906_s19 + $0x2f0] sm:$0xff]  ;;  %v3528_v54 = vld [vmem:[%s5906_s19 + $0x2f8] sm:$0xff] }
 0x74c   : > { %4914 = vmatpush3.bf16.msra.mxu0 %v4911_v4  ;;  %4946 = vmatpush3.bf16.msra.mxu1 %v4943_v5  ;;  %v4967_v4 = vpack.c.bf16 %v3501_v61, %v3500_v58  ;;  %v4999_v5 = vpack.c.bf16 %v3518_v63, %v3517_v62  ;;  %v3530_v58 = vld [vmem:[%s5906_s19 + $0x300] sm:$0xff]  ;;  %v3531_v61 = vld [vmem:[%s5906_s19 + $0x308] sm:$0xff] }
 0x74d   : > { %4916 = vmatprep.subr.bf16.mxu0 %v4915_v9  ;;  %4948 = vmatprep.subr.bf16.mxu1 %v4947_v30  ;;  %v3547_v62 = vld [vmem:[%s5906_s19 + $0x380] sm:$0xff]  ;;  %v3548_v63 = vld [vmem:[%s5906_s19 + $0x388] sm:$0xff] }
 0x750   : > { %4918 = vmatpush3.bf16.msra.mxu0 %v4915_v9  ;;  %4950 = vmatpush3.bf16.msra.mxu1 %v4947_v30  ;;  %v4971_v9 = vpack.c.bf16 %v3503_v35, %v3502_v6  ;;  %v5003_v30 = vpack.c.bf16 %v3520_v7, %v3519_v33  ;;  %v3532_v6 = vld [vmem:[%s5906_s19 + $0x310] sm:$0xff]  ;;  %v3533_v35 = vld [vmem:[%s5906_s19 + $0x318] sm:$0xff] }
 0x751   : > { %4920 = vmatprep.subr.bf16.mxu0 %v4919_v27  ;;  %4952 = vmatprep.subr.bf16.mxu1 %v4951_v29  ;;  %v3549_v33 = vld [vmem:[%s5906_s19 + $0x390] sm:$0xff]  ;;  %v3550_v7 = vld [vmem:[%s5906_s19 + $0x398] sm:$0xff] }
 0x754   : > { %4922 = vmatpush3.bf16.msra.mxu0 %v4919_v27  ;;  %4954 = vmatpush3.bf16.msra.mxu1 %v4951_v29  ;;  %v4975_v27 = vpack.c.bf16 %v3505_v17, %v3504_v34  ;;  %v5007_v29 = vpack.c.bf16 %v3522_v19, %v3521_v18  ;;  %v3534_v34 = vld [vmem:[%s5906_s19 + $0x320] sm:$0xff]  ;;  %v3535_v17 = vld [vmem:[%s5906_s19 + $0x328] sm:$0xff] }
 0x755   : > { %4924 = vmatprep.subr.bf16.mxu0 %v4923_v40  ;;  %4956 = vmatprep.subr.bf16.mxu1 %v4955_v41  ;;  %v3551_v18 = vld [vmem:[%s5906_s19 + $0x3a0] sm:$0xff]  ;;  %v3552_v19 = vld [vmem:[%s5906_s19 + $0x3a8] sm:$0xff] }
 0x758   : > { %4926 = vmatpush3.bf16.msra.mxu0 %v4923_v40  ;;  %4958 = vmatpush3.bf16.msra.mxu1 %v4955_v41  ;;  %v4979_v40 = vpack.c.bf16 %v3507_v57, %v3506_v60  ;;  %v5011_v41 = vpack.c.bf16 %v3524_v39, %v3523_v59  ;;  %v3536_v60 = vld [vmem:[%s5906_s19 + $0x330] sm:$0xff]  ;;  %v3537_v57 = vld [vmem:[%s5906_s19 + $0x338] sm:$0xff] }
 0x759   : > { %4960 = vmatprep.subr.bf16.mxu0 %v4959_v36  ;;  %4992 = vmatprep.subr.bf16.mxu1 %v4991_v46  ;;  %v3553_v59 = vld [vmem:[%s5906_s19 + $0x3b0] sm:$0xff]  ;;  %v3554_v39 = vld [vmem:[%s5906_s19 + $0x3b8] sm:$0xff] }
 0x75b   : > { %4364 = vmatmul.mubr.f32.vlgmr.msra.gmra.mrb[24].mxu0 %v5959_v15  ;;  %4402 = vmatmul.mubr.f32.vlgmr.msra.gmra.mrb[24].mxu1 %v5959_v15 }
 0x75c   : > { %4366 = vmatprep.mubr.f32.mxu0 %v5984_v28  ;;  %4404 = vmatprep.mubr.f32.mxu1 %v5984_v28 }
 0x75d   : > { %4962 = vmatpush3.bf16.msra.mxu0 %v4959_v36  ;;  %4994 = vmatpush3.bf16.msra.mxu1 %v4991_v46  ;;  %v4983_v36 = vpack.c.bf16 %v3509_v44, %v3508_v42  ;;  %v5015_v46 = vpack.c.bf16 %v3526_v55, %v3525_v45  ;;  %v3538_v42 = vld [vmem:[%s5906_s19 + $0x340] sm:$0xff]  ;;  %v3539_v44 = vld [vmem:[%s5906_s19 + $0x348] sm:$0xff] }
 0x75e   : > { %4964 = vmatprep.subr.bf16.mxu0 %v4963_v22  ;;  %4996 = vmatprep.subr.bf16.mxu1 %v4995_v23  ;;  %v3555_v45 = vld [vmem:[%s5906_s19 + $0x3c0] sm:$0xff]  ;;  %v3556_v55 = vld [vmem:[%s5906_s19 + $0x3c8] sm:$0xff] }
 0x75f   : > { %4367 = vmatmul.mubr.f32.gmra.mrb[26].mxu0 %v5981_v10  ;;  %4405 = vmatmul.mubr.f32.gmra.mrb[26].mxu1 %v5981_v10 }
 0x760   : > { %4439 = vmatprep.mubr.f32.mxu0 %v5962_v16  ;;  %4477 = vmatprep.mubr.f32.mxu1 %v5962_v16 }
 0x761   : > { %4966 = vmatpush3.bf16.msra.mxu0 %v4963_v22  ;;  %4998 = vmatpush3.bf16.msra.mxu1 %v4995_v23  ;;  %v4987_v22 = vpack.c.bf16 %v3511_v56, %v3510_v0  ;;  %v5019_v23 = vpack.c.bf16 %v3528_v54, %v3527_v3  ;;  %v3541_v0 = vld [vmem:[%s5906_s19 + $0x358] sm:$0xff]  ;;  %v3557_v56 = vld [vmem:[%s5906_s19 + $0x3d0] sm:$0xff] }
 0x762   : > { %4968 = vmatprep.subr.bf16.mxu0 %v4967_v4  ;;  %5000 = vmatprep.subr.bf16.mxu1 %v4999_v5  ;;  %v3558_v3 = vld [vmem:[%s5906_s19 + $0x3d8] sm:$0xff] }
 0x765   : > { %4970 = vmatpush3.bf16.msra.mxu0 %v4967_v4  ;;  %5002 = vmatpush3.bf16.msra.mxu1 %v4999_v5  ;;  %v5023_v4 = vpack.c.bf16 %v3531_v61, %v3530_v58  ;;  %v5055_v5 = vpack.c.bf16 %v3548_v63, %v3547_v62  ;;  %v3543_v58 = vld [vmem:[%s5906_s19 + $0x368] sm:$0xff]  ;;  %v3559_v61 = vld [vmem:[%s5906_s19 + $0x3e0] sm:$0xff] }
 0x766   : > { %4972 = vmatprep.subr.bf16.mxu0 %v4971_v9  ;;  %5004 = vmatprep.subr.bf16.mxu1 %v5003_v30  ;;  %v3560_v62 = vld [vmem:[%s5906_s19 + $0x3e8] sm:$0xff] }
 0x769   : > { %4974 = vmatpush3.bf16.msra.mxu0 %v4971_v9  ;;  %5006 = vmatpush3.bf16.msra.mxu1 %v5003_v30  ;;  %v5027_v9 = vpack.c.bf16 %v3533_v35, %v3532_v6  ;;  %v5059_v30 = vpack.c.bf16 %v3550_v7, %v3549_v33  ;;  %v3545_v6 = vld [vmem:[%s5906_s19 + $0x378] sm:$0xff]  ;;  %v3561_v35 = vld [vmem:[%s5906_s19 + $0x3f0] sm:$0xff] }
 0x76a   : > { %4976 = vmatprep.subr.bf16.mxu0 %v4975_v27  ;;  %5008 = vmatprep.subr.bf16.mxu1 %v5007_v29  ;;  %v3562_v33 = vld [vmem:[%s5906_s19 + $0x3f8] sm:$0xff] }
 0x76d   : > { %4978 = vmatpush3.bf16.msra.mxu0 %v4975_v27  ;;  %5010 = vmatpush3.bf16.msra.mxu1 %v5007_v29  ;;  %v5031_v27 = vpack.c.bf16 %v3535_v17, %v3534_v34  ;;  %v5063_v29 = vpack.c.bf16 %v3552_v19, %v3551_v18 }
 0x76e   : > { %4980 = vmatprep.subr.bf16.mxu0 %v4979_v40  ;;  %5012 = vmatprep.subr.bf16.mxu1 %v5011_v41 }
 0x771   : > { %4982 = vmatpush3.bf16.msra.mxu0 %v4979_v40  ;;  %5014 = vmatpush3.bf16.msra.mxu1 %v5011_v41  ;;  %v5035_v40 = vpack.c.bf16 %v3537_v57, %v3536_v60  ;;  %v5067_v41 = vpack.c.bf16 %v3554_v39, %v3553_v59 }
 0x772   : > { %4984 = vmatprep.subr.bf16.mxu0 %v4983_v36  ;;  %5016 = vmatprep.subr.bf16.mxu1 %v5015_v46 }
 0x775   : > { %4986 = vmatpush3.bf16.msra.mxu0 %v4983_v36  ;;  %5018 = vmatpush3.bf16.msra.mxu1 %v5015_v46  ;;  %v5071_v36 = vpack.c.bf16 %v3556_v55, %v3555_v45  ;;  %v3540_v46 = vld [vmem:[%s5906_s19 + $0x350] sm:$0xff] }
 0x776   : > { %4988 = vmatprep.subr.bf16.mxu0 %v4987_v22  ;;  %5020 = vmatprep.subr.bf16.mxu1 %v5019_v23  ;;  %v5043_v54 = vpack.c.bf16 %v3541_v0, %v3540_v46 }
 0x779   : > { %4990 = vmatpush3.bf16.msra.mxu0 %v4987_v22  ;;  %5022 = vmatpush3.bf16.msra.mxu1 %v5019_v23  ;;  %v5075_v22 = vpack.c.bf16 %v3558_v3, %v3557_v56  ;;  %v3542_v23 = vld [vmem:[%s5906_s19 + $0x360] sm:$0xff] }
 0x77a   : > { %5024 = vmatprep.subr.bf16.mxu0 %v5023_v4  ;;  %5056 = vmatprep.subr.bf16.mxu1 %v5055_v5  ;;  %v5047_v63 = vpack.c.bf16 %v3543_v58, %v3542_v23 }
 0x77c   : > { %4440 = vmatmul.mubr.f32.vlgmr.msra.gmra.mrb[28].mxu0 %v5959_v15  ;;  %4478 = vmatmul.mubr.f32.vlgmr.msra.gmra.mrb[28].mxu1 %v5959_v15 }
 0x77d   : > { %4442 = vmatprep.mubr.f32.mxu0 %v5984_v28  ;;  %4480 = vmatprep.mubr.f32.mxu1 %v5984_v28 }
 0x77e   : > { %5026 = vmatpush3.bf16.msra.mxu0 %v5023_v4  ;;  %5058 = vmatpush3.bf16.msra.mxu1 %v5055_v5  ;;  %v5079_v4 = vpack.c.bf16 %v3560_v62, %v3559_v61  ;;  %v3544_v5 = vld [vmem:[%s5906_s19 + $0x370] sm:$0xff] }
 0x77f   : > { %5028 = vmatprep.subr.bf16.mxu0 %v5027_v9  ;;  %5060 = vmatprep.subr.bf16.mxu1 %v5059_v30  ;;  %v5051_v7 = vpack.c.bf16 %v3545_v6, %v3544_v5 }
 0x780   : > { %4443 = vmatmul.mubr.f32.gmra.mrb[30].mxu0 %v5981_v10  ;;  %4481 = vmatmul.mubr.f32.gmra.mrb[30].mxu1 %v5981_v10 }
 0x781   : > { %4515 = vmatprep.mubr.f32.mxu0 %v5962_v16  ;;  %4553 = vmatprep.mubr.f32.mxu1 %v5962_v16  ;;  %v5039_v16 = vpack.c.bf16 %v3539_v44, %v3538_v42 }
 0x782   : > { %5030 = vmatpush3.bf16.msra.mxu0 %v5027_v9  ;;  %5062 = vmatpush3.bf16.msra.mxu1 %v5059_v30  ;;  %v5083_v9 = vpack.c.bf16 %v3562_v33, %v3561_v35 }
 0x783   : > { %5032 = vmatprep.subr.bf16.mxu0 %v5031_v27  ;;  %5064 = vmatprep.subr.bf16.mxu1 %v5063_v29 }
 0x786   : > { %5034 = vmatpush3.bf16.msra.mxu0 %v5031_v27  ;;  %5066 = vmatpush3.bf16.msra.mxu1 %v5063_v29 }
 0x787   : > { %5036 = vmatprep.subr.bf16.mxu0 %v5035_v40  ;;  %5068 = vmatprep.subr.bf16.mxu1 %v5067_v41 }
 0x78a   : > { %5038 = vmatpush3.bf16.msra.mxu0 %v5035_v40  ;;  %5070 = vmatpush3.bf16.msra.mxu1 %v5067_v41 }
 0x78b   : > { %5040 = vmatprep.subr.bf16.mxu0 %v5039_v16  ;;  %5072 = vmatprep.subr.bf16.mxu1 %v5071_v36 }
 0x78e   : > { %5042 = vmatpush3.bf16.msra.mxu0 %v5039_v16  ;;  %5074 = vmatpush3.bf16.msra.mxu1 %v5071_v36 }
 0x78f   : > { %5044 = vmatprep.subr.bf16.mxu0 %v5043_v54  ;;  %5076 = vmatprep.subr.bf16.mxu1 %v5075_v22 }
 0x792   : > { %5046 = vmatpush3.bf16.msra.mxu0 %v5043_v54  ;;  %5078 = vmatpush3.bf16.msra.mxu1 %v5075_v22 }
 0x793   : > { %5048 = vmatprep.subr.bf16.mxu0 %v5047_v63  ;;  %5080 = vmatprep.subr.bf16.mxu1 %v5079_v4 }
 0x796   : > { %5050 = vmatpush3.bf16.msra.mxu0 %v5047_v63  ;;  %5082 = vmatpush3.bf16.msra.mxu1 %v5079_v4 }
 0x797   : > { %5052 = vmatprep.subr.bf16.mxu0 %v5051_v7  ;;  %5084 = vmatprep.subr.bf16.mxu1 %v5083_v9 }
 0x79a   : > { %5054 = vmatpush3.bf16.msra.mxu0 %v5051_v7  ;;  %5086 = vmatpush3.bf16.msra.mxu1 %v5083_v9 }
 0x79d   : > { %4516 = vmatmul.mubr.f32.vlgmr.msra.gmra.mrb[32].mxu0 %v5959_v15  ;;  %4554 = vmatmul.mubr.f32.vlgmr.msra.gmra.mrb[32].mxu1 %v5959_v15 }
 0x79e   : > { %4518 = vmatprep.mubr.f32.mxu0 %v5984_v28  ;;  %4556 = vmatprep.mubr.f32.mxu1 %v5984_v28 }
 0x7a1   : > { %4519 = vmatmul.mubr.f32.gmra.mrb[34].mxu0 %v5981_v10  ;;  %4557 = vmatmul.mubr.f32.gmra.mrb[34].mxu1 %v5981_v10 }
 0x80d   : > { %v4289_v30 = vpop.f32.mrb[20].mxu0  ;;  %v4327_v34 = vpop.f32.mrb[20].mxu1 }
 0x80e   : > { %v2251_v17 = vmul.f32 %v4289_v30, %v5813_v51  ;;  %v2361_v18 = vmul.f32 %v4327_v34, %v5815_v52  ;;  %v2231_v19 = vpop.f32.mrb[21].mxu0  ;;  %v2341_v27 = vpop.f32.mrb[21].mxu1 }
 0x80f   : > { %v2250_v29 = vmul.f32 %v2231_v19, %v5811_v50  ;;  %v2360_v15 = vmul.f32 %v2341_v27, %v5817_v1 }
 0x810   : > { %v2365_v60 = vadd.f32 %v2361_v18, %v2251_v17 }
 0x811   : > { %v2364_v57 = vadd.f32 %v2360_v15, %v2250_v29 }
 0x812   : > { %v4292_v59 = vpop.f32.mrb[22].mxu0  ;;  %v4330_v28 = vpop.f32.mrb[22].mxu1 }
 0x813   : > { %v2253_v39 = vmul.f32 %v4292_v59, %v5813_v51  ;;  %v2363_v10 = vmul.f32 %v4330_v28, %v5815_v52  ;;  %v2241_v40 = vpop.f32.mrb[23].mxu0  ;;  %v2351_v41 = vpop.f32.mrb[23].mxu1 }
 0x814   : > { %v2252_v42 = vmul.f32 %v2241_v40, %v5811_v50  ;;  %v2362_v44 = vmul.f32 %v2351_v41, %v5817_v1 }
 0x815   : > { %v2367_v45 = vadd.f32 %v2363_v10, %v2253_v39 }
 0x816   : > { %v2366_v55 = vadd.f32 %v2362_v44, %v2252_v42 }
 0x82e   : > { %v4365_v16 = vpop.f32.mrb[24].mxu0  ;;  %v4403_v36 = vpop.f32.mrb[24].mxu1 }
 0x82f   : > { %v2471_v46 = vmul.f32 %v4365_v16, %v5829_v12  ;;  %v2451_v0 = vpop.f32.mrb[25].mxu0  ;;  %v2561_v56 = vpop.f32.mrb[25].mxu1  ;;  %v2581_v51 = vmul.f32 %v4403_v36, %v5831_v13 }
 0x830   : > { %v2470_v3 = vmul.f32 %v2451_v0, %v5827_v11  ;;  %v2580_v22 = vmul.f32 %v2561_v56, %v5833_v14 }
 0x831   : > { %v2475_v54 = vadd.f32 %v2471_v46, %v2365_v60 }
 0x832   : > { %v2474_v52 = vadd.f32 %v2470_v3, %v2364_v57  ;;  %v4368_v23 = vpop.f32.mrb[26].mxu0  ;;  %v4406_v50 = vpop.f32.mrb[26].mxu1  ;;  %v3030_v3 = vld [vmem:[%s3028_s22 + $0x8] sm:$0xff] }
 0x833   : > { %v2585_v58 = vadd.f32 %v2581_v51, %v2475_v54  ;;  %v2473_v1 = vmul.f32 %v4368_v23, %v5829_v12  ;;  %v2461_v61 = vpop.f32.mrb[27].mxu0  ;;  %v2571_v62 = vpop.f32.mrb[27].mxu1  ;;  %v2583_v6 = vmul.f32 %v4406_v50, %v5831_v13  ;;  %v3029_v23 = vld [vmem:[%s3028_s22] sm:$0xff] }
 0x834   : > { %v2584_v63 = vadd.f32 %v2580_v22, %v2474_v52  ;;  %v2472_v4 = vmul.f32 %v2461_v61, %v5827_v11  ;;  %v2582_v33 = vmul.f32 %v2571_v62, %v5833_v14 }
 0x835   : > { %v2477_v5 = vadd.f32 %v2473_v1, %v2367_v45 }
 0x836   : > { %v2476_v35 = vadd.f32 %v2472_v4, %v2366_v55 }
 0x837   : > { %v2587_v7 = vadd.f32 %v2583_v6, %v2477_v5 }
 0x838   : > { %v2586_v9 = vadd.f32 %v2582_v33, %v2476_v35 }
 0x84f   : > { %v4441_v30 = vpop.f32.mrb[28].mxu0  ;;  %v4479_v34 = vpop.f32.mrb[28].mxu1 }
 0x850   : > { %v2691_v17 = vmul.f32 %v4441_v30, %v5847_v53  ;;  %v2671_v18 = vpop.f32.mrb[29].mxu0  ;;  %v2781_v19 = vpop.f32.mrb[29].mxu1  ;;  %v2801_v29 = vmul.f32 %v4479_v34, %v5849_v8 }
 0x851   : > { %v2690_v12 = vmul.f32 %v2671_v18, %v5843_v49  ;;  %v2800_v15 = vmul.f32 %v2781_v19, %v5845_v48  ;;  %v3043_v19 = vsub.f32 1.0, %v5883_v38 }
 0x852   : > { %v2695_v27 = vadd.f32 %v2691_v17, %v2585_v58 }
 0x853   : > { %v2694_v11 = vadd.f32 %v2690_v12, %v2584_v63  ;;  %v4444_v13 = vpop.f32.mrb[30].mxu0  ;;  %v4482_v60 = vpop.f32.mrb[30].mxu1  ;;  %v3040_v12 = vmul.f32 %v5881_v37, %v5549_v32 }
 0x854   : > { %v2805_v14 = vadd.f32 %v2801_v29, %v2695_v27  ;;  %v2693_v57 = vmul.f32 %v4444_v13, %v5847_v53  ;;  %v2681_v59 = vpop.f32.mrb[31].mxu0  ;;  %v2791_v28 = vpop.f32.mrb[31].mxu1  ;;  %v2803_v41 = vmul.f32 %v4482_v60, %v5849_v8  ;;  %v3046_v60 = vsub.f32 1.0, %v5889_v43 }
 0x855   : > { %v2804_v39 = vadd.f32 %v2800_v15, %v2694_v11  ;;  %v2692_v10 = vmul.f32 %v2681_v59, %v5843_v49  ;;  %v2802_v44 = vmul.f32 %v2791_v28, %v5845_v48  ;;  %v3039_v11 = vmul.f32 %v5883_v38, %v5541_v26 }
 0x856   : > { %v2697_v40 = vadd.f32 %v2693_v57, %v2587_v7  ;;  %v3045_v59 = vsub.f32 1.0, %v5891_v47  ;;  %v3042_v28 = vmul.f32 %v5889_v43, %v5547_v31  ;;  %v3041_v26 = vmul.f32 %v5891_v47, %v5539_v24 }
 0x857   : > { %v2696_v42 = vadd.f32 %v2692_v10, %v2586_v9 }
 0x858   : > { %v2807_v45 = vadd.f32 %v2803_v41, %v2697_v40 }
 0x859   : > { %v2806_v55 = vadd.f32 %v2802_v44, %v2696_v42 }
 0x870   : > { %v4517_v16 = vpop.f32.mrb[32].mxu0  ;;  %v4555_v36 = vpop.f32.mrb[32].mxu1 }
 0x871   : > { %v2911_v46 = vmul.f32 %v4517_v16, %v5861_v20  ;;  %v2891_v53 = vpop.f32.mrb[33].mxu0  ;;  %v3001_v0 = vpop.f32.mrb[33].mxu1  ;;  %v3021_v8 = vmul.f32 %v4555_v36, %v5864_v21 }
 0x872   : > { %v2910_v49 = vmul.f32 %v2891_v53, %v5859_v2  ;;  %v3020_v54 = vmul.f32 %v3001_v0, %v5866_v25 }
 0x873   : > { %v2915_v56 = vadd.f32 %v2911_v46, %v2805_v14 }
 0x874   : > { %v2914_v48 = vadd.f32 %v2910_v49, %v2804_v39  ;;  %v4520_v51 = vpop.f32.mrb[34].mxu0  ;;  %v4558_v52 = vpop.f32.mrb[34].mxu1 }
 0x875   : > { %v3025_v22 = vadd.f32 %v3021_v8, %v2915_v56  ;;  %v2913_v50 = vmul.f32 %v4520_v51, %v5861_v20  ;;  %v2901_v58 = vpop.f32.mrb[35].mxu0  ;;  %v3011_v1 = vpop.f32.mrb[35].mxu1  ;;  %v3023_v5 = vmul.f32 %v4558_v52, %v5864_v21 }
 0x876   : > { %v3024_v61 = vadd.f32 %v3020_v54, %v2914_v48  ;;  %v2912_v62 = vmul.f32 %v2901_v58, %v5859_v2  ;;  %v3022_v33 = vmul.f32 %v3011_v1, %v5866_v25  ;;  %v3044_v25 = vsub.f32 1.0, %v5881_v37 }
 0x877   : > { %v3032_v63 = vadd.f32 %v3030_v3, %v3025_v22  ;;  %v2917_v4 = vadd.f32 %v2913_v50, %v2807_v45 }
 0x878   : > { %v3031_v6 = vadd.f32 %v3029_v23, %v3024_v61  ;;  %v2916_v35 = vadd.f32 %v2912_v62, %v2806_v55 }
 0x879   : > { %5244 = vtanh.f32 %v3032_v63  ;;  %v3027_v7 = vadd.f32 %v3023_v5, %v2917_v4 }
 0x87a   : > { %5246 = vtanh.f32 %v3031_v6  ;;  %v3026_v9 = vadd.f32 %v3022_v33, %v2916_v35 }
 0x87b   : > { %v3034_v30 = vadd.f32 %v3030_v3, %v3027_v7 }
 0x87c   : > { %v3033_v20 = vadd.f32 %v3029_v23, %v3026_v9 }
 0x87d   : > { %5248 = vtanh.f32 %v3034_v30 }
 0x87e   : > { %5250 = vtanh.f32 %v3033_v20 }
 0x883   : > { %v5245_v34 = vpop.eup %5244 }
 0x884   : > { %v5247_v17 = vpop.eup %5246  ;;  %3053 = vrot.lane.b32.xlu1 %v5245_v34, %s5343_s24 }
 0x885   : > { %3051 = vrot.lane.b32.xlu0 %v5247_v17, %s5343_s24 }
 0x887   : > { %v5249_v2 = vpop.eup %5248 }
 0x888   : > { %v5251_v21 = vpop.eup %5250  ;;  %3057 = vrot.lane.b32.xlu1 %v5249_v2, %s5343_s24 }
 0x889   : > { %3055 = vrot.lane.b32.xlu0 %v5251_v21, %s5343_s24 }
 0x8f6   : > { %v3054_v18 = vpop.permute.xlu1 %3053 }
 0x8f7   : > { %v3064_v27 = vmul.f32 %v3054_v18, %v3044_v25  ;;  %v3052_v29 = vpop.permute.xlu0 %3051 }
 0x8f8   : > { %v3063_v15 = vmul.f32 %v3052_v29, %v3043_v19 }
 0x8f9   : > { %v3068_v13 = vadd.f32 %v3064_v27, %v3040_v12 }
 0x8fa   : > { %v3067_v14 = vadd.f32 %v3063_v15, %v3039_v11  ;;  %v3058_v57 = vpop.permute.xlu1 %3057 }
 0x8fb   : > { %v3066_v32 = vmul.f32 %v3058_v57, %v3046_v60  ;;  %3077 = vrot.lane.b32.xlu1 %v3068_v13, %s5353_s29  ;;  %v3056_v37 = vpop.permute.xlu0 %3055 }
 0x8fc   : > { %v3065_v38 = vmul.f32 %v3056_v37, %v3045_v59  ;;  %3075 = vrot.lane.b32.xlu0 %v3067_v14, %s5353_s29 }
 0x8fd   : > { %v3070_v39 = vadd.f32 %v3066_v32, %v3042_v28 }
 0x8fe   : > { %v3069_v10 = vadd.f32 %v3065_v38, %v3041_v26 }
 0x8ff   : > { %3081 = vrot.lane.b32.xlu1 %v3070_v39, %s5353_s29 }
 0x900   : > { %3079 = vrot.lane.b32.xlu0 %v3069_v10, %s5353_s29 }
 0x96d   : > { %v3078_v40 = vpop.permute.xlu1 %3077  ;;  %3095 = sbr.rel (%p3563_p13) target bundleno = 2420 (0x974), region = 68 }
 0x96e   : > { %3088 = vst.msk [vmem:[%s5477_s20 + $0x8] sm:$0xff] %vm774_vm4, %v3078_v40  ;;  %v3076_v31 = vpop.permute.xlu0 %3075  ;;  %3097 = vst.msk [vmem:[#allocation3 + $0x8] sm:$0xff] (!%p3563_p13), %vm774_vm4, %v3078_v40 }
 0x96f   : > { %3087 = vst.msk [vmem:[%s5477_s20] sm:$0xff] %vm774_vm4, %v3076_v31  ;;  %3096 = vst.msk [vmem:[#allocation3] sm:$0xff] (!%p3563_p13), %vm774_vm4, %v3076_v31 }
 0x971   : > { %v3082_v43 = vpop.permute.xlu1 %3081 }
 0x972   : > { %3090 = vst.msk [vmem:[%s5477_s20 + $0x18] sm:$0xff] %vm774_vm4, %v3082_v43  ;;  %v3080_v41 = vpop.permute.xlu0 %3079  ;;  %3099 = vst.msk [vmem:[#allocation3 + $0x18] sm:$0xff] (!%p3563_p13), %vm774_vm4, %v3082_v43 }
 0x973   : > { %3089 = vst.msk [vmem:[%s5477_s20 + $0x10] sm:$0xff] %vm774_vm4, %v3080_v41  ;;  %3098 = vst.msk [vmem:[#allocation3 + $0x10] sm:$0xff] (!%p3563_p13), %vm774_vm4, %v3080_v41 }
 0x974 PF: > { %s3570_s24 = sshll.u32 %s5332_s16, 9  ;;  %s3117_s29 = sshll.u32 %s5477_s20, 4  ;;  %s6177_s29 = int_to_ptr.vmem [resolvable:$true] %s3117_s29 }
 0x975   : > { %s6174_s19 = scalar_lea.hbm %s6237_s10, %s3570_s24  ;;  %s6241_s11 = sand.u32 1, %s5324_s14  }
 0x976   : > { %s6181_s12 = scalar_lea.sflag [#allocation5], %s6241_s11  ;;  %s5262_s22 = scalar_lea.vmem %s6177_s29, 512 }
 0x977   : > { %p5263_p0 = scmp.ne.s32.totalorder %s6177_s29, %s5262_s22  ;;  %s5354_s16 = smov [#allocation4]  }
 0x978   : > { %s5266_s27 = sshll.u32 %s5354_s16, 4  ;;  %s5267_s27 = int_to_ptr.vmem [resolvable:$false] %s5266_s27 }
 0x979   : > { %p5264_p1 = pnand %p5263_p0, %p5452_p4  ;;  %s5268_s28 = scalar_lea.vmem %s5267_s27, 1024 }
 0x97a   : > { %p5269_p3 = scmp.lt.s32.totalorder %s6177_s29, %s5267_s27  ;;  %p5270_p5 = scmp.lt.s32.totalorder %s5268_s28, %s5262_s22 }
 0x97b   : > { %p5265_p2 = pneg %p5264_p1 }
 0x97c   : > { %p5271_p6 = por %p5270_p5, %p5269_p3 }
 0x97e   : > { %p5272_p7 = pnand %p5271_p6, %p5265_p2 }
 0x980   : > { %5275 = shalt.err (!%p5272_p7)
}
 0x981   : > { %s5276_s20 = scalar_lea.hbm %s6174_s19, 512  ;;  %s5280_s11 = scalar_lea.hbm %s6237_s10, 1024 }
 0x982   : > { %p5277_p9 = scmp.ne.s32.totalorder %s6174_s19, %s5276_s20  ;;  %p5281_p12 = scmp.lt.u32.totalorder %s6174_s19, %s6237_s10 }
 0x983   : > { %p5282_p13 = scmp.lt.u32.totalorder %s5280_s11, %s5276_s20  ;;  %p5284_p1 = scmp.lt.u32.totalorder %s5276_s20, %s6174_s19 }
 0x984   : > { %p5278_p10 = pnand %p5277_p9, %p5452_p4 }
 0x985   : > { %p5283_p0 = por %p5282_p13, %p5281_p12 }
 0x986   : > { %p5279_p11 = pneg %p5278_p10 }
 0x987   : > { %p5285_p2 = por %p5284_p1, %p5283_p0 }
 0x989   : > { %p5286_p3 = pnand %p5285_p2, %p5279_p11 }
 0x98b   : > { %5289 = shalt.err (!%p5286_p3)
}
 0x98c   : > { %s5355_s22 = smov 128   ;;  %s5356_s28 = smov 8  }
 0x98d   : > { %5087 = dma.vmem_to_hbm [thread:$0]  (%p5452_p4), %s6177_s29, 512, %s6174_s19, %s6181_s12, %s5355_s22, %s5355_s22, %s5356_s28  }
 0x98e PF: > { %p5093_p5 = scmp.ge.s32.totalorder %s5340_s18, 2  ;;  %s3132_s24 = sand.u32 1, %s5320_s13  }
 0x98f   : > { %s3133_s20 = scalar_lea.sflag [#allocation5], %s3132_s24 }
 0x990   : > { %p5090_p6 = pnand %p5093_p5, %p5459_p8 }
 0x992   : > { %5315 = dma.done.wait (!%p5090_p6), %s3133_s20, 512  }
 0x993   : > { %5317 = vsyncadd (!%p5090_p6), %s3133_s20, 4294966784  ;;  %s23_s18 = sadd.s32 1, %s5340_s18   ;;  %s6242_s13 = smov %s5324_s14 }
 0x994   : > { %p20_p7 = scmp.ge.s32.totalorder %s23_s18, 4   ;;  %s6243_s14 = smov %s5328_s15 }
 0x995   : > { %s6244_s15 = smov %s5465_s26  ;;  %s6245_s16 = smov %s5336_s17 }
 0x996   : > { %s6246_s17 = smov %s6248_s21  ;;  %22 = sbr.rel (!%p20_p7) target bundleno = 4 (0x4), region = 130 }
 0x99d   :  { %3138 = vsyncpa [#allocation5], 1 }
 0x99e   :  { %3140 = vsyncpa [#allocation5 + $0x1], 1 }

</bundles_post_ra>
